<compile_context>
chip_gen: v7x
topology: tpu7x:2x2x1
jax: 0.10.0
libtpu: 0.0.40
codegen_flags: <defaults>
</compile_context>

<pallas_src>
import functools

import jax
import jax.numpy as jnp
from jax import lax
from jax.experimental import pallas as pl
from jax.experimental.pallas import tpu as pltpu


def _round_up(x, m):
    return ((x + m - 1) // m) * m


def _dsconv_kernel(xp_ref, wk_ref, bias_ref, o_ref, *, Ho, Wo, Cin, Cout_pad):
    """One batch element per grid step.

    xp_ref:   (1, Hp, Wp, Cin)      zero-padded NHWC input tile (compute dtype)
    wk_ref:   (9, Cin, Cout_pad)    fused depthwise*pointwise weights (compute dtype)
    bias_ref: (1, Cout_pad)         fused bias  pw @ db + pb  (f32, zero-padded)
    o_ref:    (1, Ho*Wo, Cout_pad)  output tile (f32); Cout_pad % 128 == 0 -> lane-dense
    """
    mxu_dtype = wk_ref.dtype
    # Upcast once; slicing/reshaping happens in f32 (proven lowering path) and the
    # operands are re-cast to the MXU dtype right before each dot.
    xp = xp_ref[0].astype(jnp.float32)                           # (Hp, Wp, Cin)

    # f32 accumulator starts from the broadcast fused bias; 9 MXU matmuls add in.
    z = jnp.broadcast_to(bias_ref[...], (Ho * Wo, Cout_pad)).astype(jnp.float32)
    for ky in range(3):
        for kx in range(3):
            k = ky * 3 + kx
            xs = xp[ky:ky + Ho, kx:kx + Wo, :].reshape(Ho * Wo, Cin)
            z = z + jnp.dot(xs.astype(mxu_dtype), wk_ref[k],
                            preferred_element_type=jnp.float32)

    o_ref[0] = z.astype(o_ref.dtype)


@functools.partial(jax.jit, static_argnames=("stride", "padding", "compute_dtype"))
def depthwise_separable_conv(x_nchw, dw_w, dw_b, pw_w, pw_b, *,
                             stride=1, padding=1, compute_dtype=jnp.bfloat16):
    """Fused depthwise-separable conv.  x_nchw: (B, Cin, H, W) -> (B, Cout, Ho, Wo)."""
    assert stride == 1  # module default; general strided depthwise not needed here
    B, Cin, H, W = x_nchw.shape
    Cout = pw_w.shape[0]
    Ho = H + 2 * padding - 2
    Wo = W + 2 * padding - 2
    Hp, Wp = H + 2 * padding, W + 2 * padding
    # Lane-dense output: pad the fused Cout axis to a multiple of 128 so the final
    # store is an unmasked full-lane vst.  Sliced off on the host after the call.
    Cout_pad = _round_up(max(Cout, 1), 128)

    # --- host-side prep (transpose + pad + cast + weight fusion fuse under jit) ---
    x = jnp.transpose(x_nchw, (0, 2, 3, 1))                                 # (B,H,W,Cin)
    xp = jnp.pad(x, ((0, 0), (padding, padding), (padding, padding), (0, 0)))
    xp = xp.astype(compute_dtype)

    # Fused weights: W_k[c,o] = dw[ky,kx,c] * pw[o,c]  (k = ky*3 + kx)
    dwf = dw_w[:, 0, :, :].reshape(Cin, 9).astype(jnp.float32).T             # (9, Cin)
    pw = pw_w[:, :, 0, 0].astype(jnp.float32)                                # (Cout, Cin)
    wk = dwf[:, :, None] * pw.T[None, :, :]                                  # (9,Cin,Cout)
    # Fused bias: pointwise(depthwise_bias) + pointwise_bias, kept in f32.
    bias = jnp.dot(pw, dw_b.astype(jnp.float32)) + pw_b.astype(jnp.float32)  # (Cout,)
    if Cout_pad != Cout:
        wk = jnp.pad(wk, ((0, 0), (0, 0), (0, Cout_pad - Cout)))
        bias = jnp.pad(bias, ((0, Cout_pad - Cout),))
    wk = wk.astype(compute_dtype)                                            # (9,Cin,Cp)
    bias = bias.reshape(1, Cout_pad)                                         # (1,Cp) f32

    kern = functools.partial(_dsconv_kernel, Ho=Ho, Wo=Wo, Cin=Cin, Cout_pad=Cout_pad)
    out = pl.pallas_call(
        kern,
        out_shape=jax.ShapeDtypeStruct((B, Ho * Wo, Cout_pad), jnp.float32),
        grid=(B,),
        in_specs=[
            pl.BlockSpec((1, Hp, Wp, Cin), lambda b: (b, 0, 0, 0)),
            pl.BlockSpec((9, Cin, Cout_pad), lambda b: (0, 0, 0)),
            pl.BlockSpec((1, Cout_pad), lambda b: (0, 0)),
        ],
        out_specs=pl.BlockSpec((1, Ho * Wo, Cout_pad), lambda b: (b, 0, 0)),
        compiler_params=pltpu.CompilerParams(
            dimension_semantics=("parallel",),       # B=2 steps -> both v7x TCs
            vmem_limit_bytes=32 * 1024 * 1024,       # explicit; demo uses ~1 MiB
        ),
    )(xp, wk, bias)

    out = out.reshape(B, Ho, Wo, Cout_pad)[..., :Cout]                       # drop pad
    return jnp.transpose(out, (0, 3, 1, 2)).astype(x_nchw.dtype)             # NCHW


def _reference(x_nchw, dw_w, dw_b, pw_w, pw_b, *, padding=1):
    """Pure-JAX reference matching the PyTorch module forward (f32)."""
    B, Cin, H, W = x_nchw.shape
    Cout = pw_w.shape[0]
    dn = ("NCHW", "OIHW", "NCHW")
    y = lax.conv_general_dilated(x_nchw, dw_w, (1, 1),
                                 ((padding, padding), (padding, padding)),
                                 feature_group_count=Cin, dimension_numbers=dn)
    y = y + dw_b.reshape(1, Cin, 1, 1)
    z = lax.conv_general_dilated(y, pw_w, (1, 1), ((0, 0), (0, 0)),
                                 dimension_numbers=dn)
    return z + pw_b.reshape(1, Cout, 1, 1)


if __name__ == "__main__":
    key = jax.random.PRNGKey(0)
    k1, k2, k3, k4, k5 = jax.random.split(key, 5)

    B, Cin, Cout, H, W = 2, 4, 8, 16, 16

    x = jax.random.normal(k1, (B, Cin, H, W), jnp.float32)
    # parameter shapes follow nn.Conv2d (depthwise: groups=Cin; pointwise: 1x1), bias=True
    dw_w = jax.random.normal(k2, (Cin, 1, 3, 3), jnp.float32) * 0.3
    dw_b = 0.1 * jax.random.normal(k3, (Cin,), jnp.float32)
    pw_w = jax.random.normal(k4, (Cout, Cin, 1, 1), jnp.float32) * 0.3
    pw_b = 0.1 * jax.random.normal(k5, (Cout,), jnp.float32)

    ref = _reference(x, dw_w, dw_b, pw_w, pw_b)

    # f32 compute path: tight correctness check against the reference.
    out_f32 = depthwise_separable_conv(x, dw_w, dw_b, pw_w, pw_b,
                                       compute_dtype=jnp.float32)
    out_f32 = jax.block_until_ready(out_f32)
    assert out_f32.shape == ref.shape == (B, Cout, H, W)
    assert jnp.allclose(out_f32, ref, rtol=1e-3, atol=1e-3), (
        float(jnp.max(jnp.abs(out_f32 - ref))))

    # bf16 compute path (default): halved HBM read traffic + bf16 MXU rate.
    out_bf16 = depthwise_separable_conv(x, dw_w, dw_b, pw_w, pw_b,
                                        compute_dtype=jnp.bfloat16)
    out_bf16 = jax.block_until_ready(out_bf16)
    assert out_bf16.shape == ref.shape
    assert jnp.allclose(out_bf16, ref, rtol=5e-2, atol=5e-2), (
        float(jnp.max(jnp.abs(out_bf16 - ref))))

    print("KERNEL_OK")
</pallas_src>

<mosaic_0001>
module attributes {stable_mosaic.version = 11 : i64} {
  func.func @_dsconv_kernel(%arg0: i32, %arg1: memref<1x18x18x4xf32, #tpu.memory_space<vmem>>, %arg2: memref<9x4x128xf32, #tpu.memory_space<vmem>>, %arg3: memref<1x128xf32, #tpu.memory_space<vmem>>, %arg4: memref<1x256x128xf32, #tpu.memory_space<vmem>>) attributes {dimension_semantics = [#tpu.dimension_semantics<parallel>], iteration_bounds = array<i64: 2>, scalar_prefetch = 0 : i64, scratch_operands = 0 : i64, tpu.core_type = #tpu.core_type<tc>, window_params = [{transform_indices = @transform_0, window_bounds = array<i64: 1, 18, 18, 4>}, {pipeline_mode = #tpu.pipeline_mode<synchronous>, transform_indices = @transform_1, window_bounds = array<i64: 9, 4, 128>}, {pipeline_mode = #tpu.pipeline_mode<synchronous>, transform_indices = @transform_2, window_bounds = array<i64: 1, 128>}, {transform_indices = @transform_3, window_bounds = array<i64: 1, 256, 128>}]} {
    %c0 = arith.constant 0 : index
    %c0_0 = arith.constant 0 : index
    %c0_1 = arith.constant 0 : index
    %c0_2 = arith.constant 0 : index
    %0 = vector.load %arg1[%c0, %c0_0, %c0_1, %c0_2] : memref<1x18x18x4xf32, #tpu.memory_space<vmem>>, vector<1x18x18x4xf32>
    %1 = vector.shape_cast %0 : vector<1x18x18x4xf32> to vector<18x18x4xf32>
    %c0_3 = arith.constant 0 : index
    %c0_4 = arith.constant 0 : index
    %2 = vector.load %arg3[%c0_3, %c0_4] : memref<1x128xf32, #tpu.memory_space<vmem>>, vector<1x128xf32>
    %3 = vector.shape_cast %2 : vector<1x128xf32> to vector<1x128xf32>
    %4 = vector.broadcast %3 : vector<1x128xf32> to vector<256x128xf32>
    %5 = vector.extract_strided_slice %1 {offsets = [0, 0, 0], sizes = [16, 16, 4], strides = [1, 1, 1]} : vector<18x18x4xf32> to vector<16x16x4xf32>
    %6 = vector.shape_cast %5 : vector<16x16x4xf32> to vector<256x4xf32>
    %c0_5 = arith.constant 0 : index
    %c0_6 = arith.constant 0 : index
    %c0_7 = arith.constant 0 : index
    %7 = vector.load %arg2[%c0_5, %c0_6, %c0_7] : memref<9x4x128xf32, #tpu.memory_space<vmem>>, vector<1x4x128xf32>
    %8 = vector.shape_cast %7 : vector<1x4x128xf32> to vector<4x128xf32>
    %cst = arith.constant dense<0.000000e+00> : vector<256x128xf32>
    %9 = tpu.matmul %6, %8, %cst {dimension_numbers = #tpu.dot_dimension_numbers<[1], [0], [0], [1], [0, 0, 1, 1], [], []>} : vector<256x4xf32>, vector<4x128xf32>, vector<256x128xf32> -> vector<256x128xf32>
    %10 = arith.addf %4, %9 : vector<256x128xf32>
    %11 = vector.extract_strided_slice %1 {offsets = [0, 1, 0], sizes = [16, 16, 4], strides = [1, 1, 1]} : vector<18x18x4xf32> to vector<16x16x4xf32>
    %12 = vector.shape_cast %11 : vector<16x16x4xf32> to vector<256x4xf32>
    %c1 = arith.constant 1 : index
    %c0_8 = arith.constant 0 : index
    %c0_9 = arith.constant 0 : index
    %13 = vector.load %arg2[%c1, %c0_8, %c0_9] : memref<9x4x128xf32, #tpu.memory_space<vmem>>, vector<1x4x128xf32>
    %14 = vector.shape_cast %13 : vector<1x4x128xf32> to vector<4x128xf32>
    %cst_10 = arith.constant dense<0.000000e+00> : vector<256x128xf32>
    %15 = tpu.matmul %12, %14, %cst_10 {dimension_numbers = #tpu.dot_dimension_numbers<[1], [0], [0], [1], [0, 0, 1, 1], [], []>} : vector<256x4xf32>, vector<4x128xf32>, vector<256x128xf32> -> vector<256x128xf32>
    %16 = arith.addf %10, %15 : vector<256x128xf32>
    %17 = vector.extract_strided_slice %1 {offsets = [0, 2, 0], sizes = [16, 16, 4], strides = [1, 1, 1]} : vector<18x18x4xf32> to vector<16x16x4xf32>
    %18 = vector.shape_cast %17 : vector<16x16x4xf32> to vector<256x4xf32>
    %c2 = arith.constant 2 : index
    %c0_11 = arith.constant 0 : index
    %c0_12 = arith.constant 0 : index
    %19 = vector.load %arg2[%c2, %c0_11, %c0_12] : memref<9x4x128xf32, #tpu.memory_space<vmem>>, vector<1x4x128xf32>
    %20 = vector.shape_cast %19 : vector<1x4x128xf32> to vector<4x128xf32>
    %cst_13 = arith.constant dense<0.000000e+00> : vector<256x128xf32>
    %21 = tpu.matmul %18, %20, %cst_13 {dimension_numbers = #tpu.dot_dimension_numbers<[1], [0], [0], [1], [0, 0, 1, 1], [], []>} : vector<256x4xf32>, vector<4x128xf32>, vector<256x128xf32> -> vector<256x128xf32>
    %22 = arith.addf %16, %21 : vector<256x128xf32>
    %23 = vector.extract_strided_slice %1 {offsets = [1, 0, 0], sizes = [16, 16, 4], strides = [1, 1, 1]} : vector<18x18x4xf32> to vector<16x16x4xf32>
    %24 = vector.shape_cast %23 : vector<16x16x4xf32> to vector<256x4xf32>
    %c3 = arith.constant 3 : index
    %c0_14 = arith.constant 0 : index
    %c0_15 = arith.constant 0 : index
    %25 = vector.load %arg2[%c3, %c0_14, %c0_15] : memref<9x4x128xf32, #tpu.memory_space<vmem>>, vector<1x4x128xf32>
    %26 = vector.shape_cast %25 : vector<1x4x128xf32> to vector<4x128xf32>
    %cst_16 = arith.constant dense<0.000000e+00> : vector<256x128xf32>
    %27 = tpu.matmul %24, %26, %cst_16 {dimension_numbers = #tpu.dot_dimension_numbers<[1], [0], [0], [1], [0, 0, 1, 1], [], []>} : vector<256x4xf32>, vector<4x128xf32>, vector<256x128xf32> -> vector<256x128xf32>
    %28 = arith.addf %22, %27 : vector<256x128xf32>
    %29 = vector.extract_strided_slice %1 {offsets = [1, 1, 0], sizes = [16, 16, 4], strides = [1, 1, 1]} : vector<18x18x4xf32> to vector<16x16x4xf32>
    %30 = vector.shape_cast %29 : vector<16x16x4xf32> to vector<256x4xf32>
    %c4 = arith.constant 4 : index
    %c0_17 = arith.constant 0 : index
    %c0_18 = arith.constant 0 : index
    %31 = vector.load %arg2[%c4, %c0_17, %c0_18] : memref<9x4x128xf32, #tpu.memory_space<vmem>>, vector<1x4x128xf32>
    %32 = vector.shape_cast %31 : vector<1x4x128xf32> to vector<4x128xf32>
    %cst_19 = arith.constant dense<0.000000e+00> : vector<256x128xf32>
    %33 = tpu.matmul %30, %32, %cst_19 {dimension_numbers = #tpu.dot_dimension_numbers<[1], [0], [0], [1], [0, 0, 1, 1], [], []>} : vector<256x4xf32>, vector<4x128xf32>, vector<256x128xf32> -> vector<256x128xf32>
    %34 = arith.addf %28, %33 : vector<256x128xf32>
    %35 = vector.extract_strided_slice %1 {offsets = [1, 2, 0], sizes = [16, 16, 4], strides = [1, 1, 1]} : vector<18x18x4xf32> to vector<16x16x4xf32>
    %36 = vector.shape_cast %35 : vector<16x16x4xf32> to vector<256x4xf32>
    %c5 = arith.constant 5 : index
    %c0_20 = arith.constant 0 : index
    %c0_21 = arith.constant 0 : index
    %37 = vector.load %arg2[%c5, %c0_20, %c0_21] : memref<9x4x128xf32, #tpu.memory_space<vmem>>, vector<1x4x128xf32>
    %38 = vector.shape_cast %37 : vector<1x4x128xf32> to vector<4x128xf32>
    %cst_22 = arith.constant dense<0.000000e+00> : vector<256x128xf32>
    %39 = tpu.matmul %36, %38, %cst_22 {dimension_numbers = #tpu.dot_dimension_numbers<[1], [0], [0], [1], [0, 0, 1, 1], [], []>} : vector<256x4xf32>, vector<4x128xf32>, vector<256x128xf32> -> vector<256x128xf32>
    %40 = arith.addf %34, %39 : vector<256x128xf32>
    %41 = vector.extract_strided_slice %1 {offsets = [2, 0, 0], sizes = [16, 16, 4], strides = [1, 1, 1]} : vector<18x18x4xf32> to vector<16x16x4xf32>
    %42 = vector.shape_cast %41 : vector<16x16x4xf32> to vector<256x4xf32>
    %c6 = arith.constant 6 : index
    %c0_23 = arith.constant 0 : index
    %c0_24 = arith.constant 0 : index
    %43 = vector.load %arg2[%c6, %c0_23, %c0_24] : memref<9x4x128xf32, #tpu.memory_space<vmem>>, vector<1x4x128xf32>
    %44 = vector.shape_cast %43 : vector<1x4x128xf32> to vector<4x128xf32>
    %cst_25 = arith.constant dense<0.000000e+00> : vector<256x128xf32>
    %45 = tpu.matmul %42, %44, %cst_25 {dimension_numbers = #tpu.dot_dimension_numbers<[1], [0], [0], [1], [0, 0, 1, 1], [], []>} : vector<256x4xf32>, vector<4x128xf32>, vector<256x128xf32> -> vector<256x128xf32>
    %46 = arith.addf %40, %45 : vector<256x128xf32>
    %47 = vector.extract_strided_slice %1 {offsets = [2, 1, 0], sizes = [16, 16, 4], strides = [1, 1, 1]} : vector<18x18x4xf32> to vector<16x16x4xf32>
    %48 = vector.shape_cast %47 : vector<16x16x4xf32> to vector<256x4xf32>
    %c7 = arith.constant 7 : index
    %c0_26 = arith.constant 0 : index
    %c0_27 = arith.constant 0 : index
    %49 = vector.load %arg2[%c7, %c0_26, %c0_27] : memref<9x4x128xf32, #tpu.memory_space<vmem>>, vector<1x4x128xf32>
    %50 = vector.shape_cast %49 : vector<1x4x128xf32> to vector<4x128xf32>
    %cst_28 = arith.constant dense<0.000000e+00> : vector<256x128xf32>
    %51 = tpu.matmul %48, %50, %cst_28 {dimension_numbers = #tpu.dot_dimension_numbers<[1], [0], [0], [1], [0, 0, 1, 1], [], []>} : vector<256x4xf32>, vector<4x128xf32>, vector<256x128xf32> -> vector<256x128xf32>
    %52 = arith.addf %46, %51 : vector<256x128xf32>
    %53 = vector.extract_strided_slice %1 {offsets = [2, 2, 0], sizes = [16, 16, 4], strides = [1, 1, 1]} : vector<18x18x4xf32> to vector<16x16x4xf32>
    %54 = vector.shape_cast %53 : vector<16x16x4xf32> to vector<256x4xf32>
    %c8 = arith.constant 8 : index
    %c0_29 = arith.constant 0 : index
    %c0_30 = arith.constant 0 : index
    %55 = vector.load %arg2[%c8, %c0_29, %c0_30] : memref<9x4x128xf32, #tpu.memory_space<vmem>>, vector<1x4x128xf32>
    %56 = vector.shape_cast %55 : vector<1x4x128xf32> to vector<4x128xf32>
    %cst_31 = arith.constant dense<0.000000e+00> : vector<256x128xf32>
    %57 = tpu.matmul %54, %56, %cst_31 {dimension_numbers = #tpu.dot_dimension_numbers<[1], [0], [0], [1], [0, 0, 1, 1], [], []>} : vector<256x4xf32>, vector<4x128xf32>, vector<256x128xf32> -> vector<256x128xf32>
    %58 = arith.addf %52, %57 : vector<256x128xf32>
    %c0_32 = arith.constant 0 : index
    %c0_33 = arith.constant 0 : index
    %c0_34 = arith.constant 0 : index
    %59 = vector.load %arg4[%c0_32, %c0_33, %c0_34] : memref<1x256x128xf32, #tpu.memory_space<vmem>>, vector<1x256x128xf32>
    %60 = vector.shape_cast %59 : vector<1x256x128xf32> to vector<256x128xf32>
    %61 = vector.shape_cast %58 : vector<256x128xf32> to vector<1x256x128xf32>
    tpu.vector_store %arg4[%c0_32, %c0_33, %c0_34], %61 {strides = array<i32>} : memref<1x256x128xf32, #tpu.memory_space<vmem>>, vector<1x256x128xf32>,
    return
  }
  func.func @transform_0(%arg0: i32) -> (i32, i32, i32, i32) {
    %c0_i32 = arith.constant 0 : i32
    %c0_i32_0 = arith.constant 0 : i32
    %c0_i32_1 = arith.constant 0 : i32
    %c0_i32_2 = arith.constant 0 : i32
    return %arg0, %c0_i32, %c0_i32_0, %c0_i32_1 : i32, i32, i32, i32
  }
  func.func @transform_1(%arg0: i32) -> (i32, i32, i32) {
    %c0_i32 = arith.constant 0 : i32
    %c0_i32_0 = arith.constant 0 : i32
    %c0_i32_1 = arith.constant 0 : i32
    %c0_i32_2 = arith.constant 0 : i32
    return %c0_i32, %c0_i32_0, %c0_i32_1 : i32, i32, i32
  }
  func.func @transform_2(%arg0: i32) -> (i32, i32) {
    %c0_i32 = arith.constant 0 : i32
    %c0_i32_0 = arith.constant 0 : i32
    %c0_i32_1 = arith.constant 0 : i32
    return %c0_i32, %c0_i32_0 : i32, i32
  }
  func.func @transform_3(%arg0: i32) -> (i32, i32, i32) {
    %c0_i32 = arith.constant 0 : i32
    %c0_i32_0 = arith.constant 0 : i32
    %c0_i32_1 = arith.constant 0 : i32
    return %arg0, %c0_i32, %c0_i32_0 : i32, i32, i32
  }
}

</mosaic_0001>

<bundles_post_ra>
// kernel: depthwise_separable_conv.1
= control target key start
LH: loop header
LB: loop body
LE: loop exit
PB: predicated region body
PF: predicated region fallthrough
CT: control target
= control target key end

     0   :  { %s4521_s12 = smov 0   ;;  %s5736_s0 = inlined_call_operand.vmem [shape: f32[2,18,18,4], index: 0, kind: input, shape index: {}]   ;;  %s5737_s1 = inlined_call_operand.vmem [shape: f32[9,4,128], index: 1, kind: input, shape index: {}]   ;;  %s5738_s2 = inlined_call_operand.vmem [shape: f32[1,128], index: 2, kind: input, shape index: {}]   ;;  %s5739_s3 = inlined_call_operand.vmem [shape: f32[2,256,128], index: 3, kind: output, shape index: {}]  }
   0x1 LB: > { %s3130_s13 = sadd.s32 4294967295, %s4499_s12   ;;  %p3134_p0 = scmp.ge.s32.totalorder %s4499_s12, 1  ;;  %s4499_s12 = sphi %s4521_s12, %s13_s12  }
   0x2   : > { %p137_p1 = scmp.lt.s32.totalorder %s4499_s12, 3 }
   0x4   : > { %p138_p2 = pnand %p3134_p0, %p137_p1 }
   0x6   : > { %141 = sbr.rel (%p138_p2) target bundleno = 525 (0x20d), region = 32 }
   0xd   : > { %v232_v0 = vld [vmem:[%s5737_s1] sm:$0xf]  ;;  %vm330_vm0 = vcmask 1043456   ;;  %p161_p3 = scmp.lt.s32.totalorder %s3130_s13, 1  ;;  %v3172_v1 = vld [vmem:[%s5737_s1 + $0x4] sm:$0xf] }
   0xe   : > { %3744 = vmatprep.subr.msk.mxu1 %vm330_vm0, %v232_v0  ;;  %v4539_v2 = vld [vmem:[%s5737_s1 + $0x10] sm:$0xf]  ;;  %v3308_v3 = vld [vmem:[%s5737_s1 + $0x14] sm:$0xf]  ;;  %vm233_vm1 = vcmask 31744   ;;  %vm607_vm2 = vcmask 1046528  }
   0xf   : > { %5814 = vst [vmem:[#allocation2_spill] sm:$0xff] %v4539_v2  ;;  %3745 = vmatpush3.msk.msra.mxu1 %vm330_vm0, %v232_v0  ;;  %s5917_s13 = smov (!%p161_p3, %s3130_s13), 1  ;;  %3944 = vmatprep.subr.msk.mxu0 %vm330_vm0, %v4539_v2  ;;  %v4581_v11 = vld [vmem:[%s5737_s1 + $0x8] sm:$0xf]  ;;  %vm1014_vm3 = vcmask 1045504  }
  0x10   : > { %3794 = vmatprep.subr.msk.mxu1 %vm330_vm0, %v3172_v1  ;;  %3945 = vmatpush3.msk.msra.mxu0 %vm330_vm0, %v4539_v2  ;;  %s4484_s22 = smul.u32 432, %s5917_s13  ;;  %v4641_v32 = vld [vmem:[%s5737_s1 + $0x18] sm:$0xf]  ;;  %s3446_s11 = sshll.u32 %s5917_s13, 8 }
  0x11   : > { %3994 = vmatprep.subr.msk.mxu0 %vm330_vm0, %v3308_v3  ;;  %s5669_s16 = scalar_lea.vmem %s5739_s3, %s3446_s11 }
  0x12   : > { %s4557_s25 = scalar_lea.vmem %s5736_s0, %s4484_s22 }
  0x13   : > { %v4560_v4 = vld [vmem:[%s4557_s25] sm:$0xff]  ;;  %v4563_v5 = vld [vmem:[%s4557_s25 + $0x8] sm:$0xff]  ;;  %v4566_v6 = vld [vmem:[%s4557_s25 + $0x18] sm:$0xff] }
  0x14   : > { %5815 = vst [vmem:[#allocation3_spill] sm:$0xff] %v4566_v6  ;;  %3746 = vmatprep.mubr.msk.f32.mxu1 %vm233_vm1, %v4560_v4  ;;  %v1015_v7 = vrot.slane %v4560_v4, 2  ;;  %v1016_v8 = vrot.slane %v4563_v5, 2  ;;  %v4573_v9 = vld [vmem:[%s4557_s25 + $0x20] sm:$0xff]  ;;  %v4576_v10 = vld [vmem:[%s4557_s25 + $0x30] sm:$0xff]  ;;  %v613_v12 = vrot.slane %v4566_v6, 1 }
  0x15   : > { %5816 = vst [vmem:[#allocation4_spill] sm:$0xff] %v4573_v9  ;;  %3747 = vmatmul.mubr.msk.f32.vlgmr.msra.gmra.mrb[0].mxu1 %vm233_vm1, %v4563_v5  ;;  %v614_v13 = vrot.slane %v4573_v9, 1  ;;  %v4588_v14 = vld [vmem:[%s4557_s25 + $0x28] sm:$0x3]  ;;  %v4591_v15 = vld [vmem:[%s4557_s25 + $0x38] sm:$0xff]  ;;  %v618_v16 = vrot.slane %v4576_v10, 1 }
  0x16   : > { %5817 = vst [vmem:[#allocation5_spill] sm:$0xff] %v4591_v15  ;;  %3795 = vmatpush3.msk.msra.mxu1 %vm330_vm0, %v3172_v1  ;;  %3749 = vmatprep.mubr.msk.f32.mxu1 %vm233_vm1, %v4566_v6  ;;  %v616_v17 = vrot.slane %v4588_v14, 1  ;;  %v619_v18 = vrot.slane %v4591_v15, 1  ;;  %v4600_v19 = vld [vmem:[%s4557_s25 + $0x40] sm:$0x3]  ;;  %v4603_v20 = vld [vmem:[%s4557_s25 + $0x48] sm:$0xff]  ;;  %v4621_v26 = vsel %vm1014_vm3, %v1015_v7, %v1016_v8 }
  0x17   : > { %v4606_v21 = vsel %vm607_vm2, %v613_v12, %v614_v13  ;;  %v621_v22 = vrot.slane %v4600_v19, 1  ;;  %v4610_v23 = vld [vmem:[%s4557_s25 + $0x50] sm:$0xff]  ;;  %v623_v24 = vrot.slane %v4603_v20, 1  ;;  %v4614_v25 = vld [vmem:[%s4557_s25 + $0x58] sm:$0x3]  ;;  %3844 = vmatprep.subr.msk.mxu1 %vm330_vm0, %v4581_v11  ;;  %v4633_v30 = vld [vmem:[%s4557_s25 + $0x60] sm:$0xff] }
  0x18   : > { %3946 = vmatprep.mubr.msk.f32.mxu0 %vm233_vm1, %v4606_v21  ;;  %v4626_v27 = vsel %vm607_vm2, %v614_v13, %v616_v17  ;;  %v4629_v28 = vsel %vm607_vm2, %v618_v16, %v619_v18  ;;  %v624_v29 = vrot.slane %v4610_v23, 1  ;;  %v4636_v31 = vld [vmem:[%s4557_s25 + $0x68] sm:$0xff]  ;;  %v626_v34 = vrot.slane %v4614_v25, 1  ;;  %v4662_v38 = vld [vmem:[%s4557_s25 + $0x70] sm:$0x3]  ;;  %v4667_v39 = vld [vmem:[%s4557_s25 + $0x78] sm:$0xff] }
  0x19   : > { %5818 = vst [vmem:[#allocation6_spill] sm:$0xff] %v4636_v31  ;;  %3947 = vmatmul.mubr.msk.f32.vlgmr.msra.gmra.mrb[0].mxu0 %vm233_vm1, %v4626_v27  ;;  %3750 = vmatmul.mubr.msk.f32.gmra.mrb[2].mxu1 %vm233_vm1, %v4573_v9  ;;  %v4651_v33 = vsel %vm607_vm2, %v619_v18, %v621_v22  ;;  %v628_v36 = vrot.slane %v4633_v30, 1  ;;  %v629_v37 = vrot.slane %v4636_v31, 1  ;;  %v4670_v40 = vld [vmem:[%s4557_s25 + $0x80] sm:$0xff]  ;;  %v631_v42 = vrot.slane %v4662_v38, 1  ;;  %v4693_v47 = vld [vmem:[%s4557_s25 + $0x90] sm:$0xff] }
  0x1a   : > { %3995 = vmatpush3.msk.msra.mxu0 %vm330_vm0, %v3308_v3  ;;  %3949 = vmatprep.mubr.msk.f32.mxu0 %vm233_vm1, %v4629_v28  ;;  %v4657_v35 = vsel %vm607_vm2, %v623_v24, %v624_v29  ;;  %5820 = vst [vmem:[#allocation8_spill] sm:$0xff] %v4670_v40  ;;  %v4681_v41 = vsel %vm607_vm2, %v624_v29, %v626_v34  ;;  %v633_v44 = vrot.slane %v4667_v39, 1  ;;  %v634_v45 = vrot.slane %v4670_v40, 1  ;;  %v4690_v46 = vld [vmem:[%s4557_s25 + $0x88] sm:$0x3]  ;;  %v4696_v48 = vld [vmem:[%s4557_s25 + $0x98] sm:$0xff] }
  0x1b   : > { %3752 = vmatprep.mubr.msk.f32.mxu1 %vm233_vm1, %v4576_v10  ;;  %5819 = vst [vmem:[#allocation7_spill] sm:$0xff] %v4657_v35  ;;  %4044 = vmatprep.subr.msk.mxu0 %vm330_vm0, %v4641_v32  ;;  %5821 = vst [vmem:[#allocation9_spill] sm:$0xff] %v4681_v41  ;;  %v4685_v43 = vsel %vm607_vm2, %v628_v36, %v629_v37  ;;  %v4707_v49 = vsel %vm607_vm2, %v629_v37, %v631_v42  ;;  %v636_v50 = vrot.slane %v4690_v46, 1  ;;  %v4716_v54 = vld [vmem:[%s4557_s25 + $0xa0] sm:$0x3]  ;;  %v4719_v55 = vld [vmem:[%s4557_s25 + $0xa8] sm:$0xff] }
  0x1c   : > { %5822 = vst [vmem:[#allocation10_spill] sm:$0xff] %v4685_v43  ;;  %5823 = vst [vmem:[#allocation11_spill] sm:$0xff] %v4707_v49  ;;  %v4711_v51 = vsel %vm607_vm2, %v633_v44, %v634_v45  ;;  %v638_v52 = vrot.slane %v4693_v47, 1  ;;  %v639_v53 = vrot.slane %v4696_v48, 1  ;;  %v4722_v56 = vld [vmem:[%s4557_s25 + $0xb0] sm:$0xff]  ;;  %v641_v58 = vrot.slane %v4716_v54, 1 }
  0x1d   : > { %3950 = vmatmul.mubr.msk.f32.gmra.mrb[2].mxu0 %vm233_vm1, %v4651_v33  ;;  %3753 = vmatmul.mubr.msk.f32.gmra.mrb[4].mxu1 %vm233_vm1, %v4591_v15  ;;  %5824 = vst [vmem:[#allocation12_spill] sm:$0xff] %v4711_v51  ;;  %v4733_v57 = vsel %vm607_vm2, %v634_v45, %v636_v50  ;;  %v643_v60 = vrot.slane %v4719_v55, 1  ;;  %v644_v61 = vrot.slane %v4722_v56, 1  ;;  %v4742_v62 = vld [vmem:[%s4557_s25 + $0xb8] sm:$0x3]  ;;  %v4745_v63 = vld [vmem:[%s4557_s25 + $0xc0] sm:$0xff] }
  0x1e   : > { %3952 = vmatprep.mubr.msk.f32.mxu0 %vm233_vm1, %v4657_v35  ;;  %3755 = vmatprep.mubr.msk.f32.mxu1 %vm233_vm1, %v4603_v20  ;;  %v4737_v59 = vsel %vm607_vm2, %v638_v52, %v639_v53  ;;  %v4748_v0 = vld [vmem:[%s4557_s25 + $0xc8] sm:$0xff]  ;;  %v4759_v1 = vsel %vm607_vm2, %v639_v53, %v641_v58  ;;  %v646_v3 = vrot.slane %v4742_v62, 1  ;;  %v648_v12 = vrot.slane %v4745_v63, 1  ;;  %v4768_v16 = vld [vmem:[%s4557_s25 + $0xd0] sm:$0x3]  ;;  %v4803_v42 = vld [vmem:[%s4557_s25 + $0xd8] sm:$0xff] }
  0x1f   : > { %v4763_v7 = vsel %vm607_vm2, %v643_v60, %v644_v61  ;;  %v649_v13 = vrot.slane %v4748_v0, 1  ;;  %v651_v18 = vrot.slane %v4768_v16, 1  ;;  %v1020_v24 = vrot.slane %v4566_v6, 2  ;;  %v4819_v50 = vld [vmem:[%s4557_s25 + $0xe0] sm:$0xff] }
  0x20   : > { %v4779_v17 = vsel %vm607_vm2, %v644_v61, %v646_v3  ;;  %v1021_v29 = vrot.slane %v4573_v9, 2  ;;  %v1023_v34 = vrot.slane %v4588_v14, 2  ;;  %v1025_v44 = vrot.slane %v4576_v10, 2  ;;  %v4828_v61 = vld [vmem:[%s4557_s25 + $0xf0] sm:$0xff]  ;;  %v4833_v3 = vld [vmem:[%s5737_s1 + $0x1c] sm:$0xf] }
  0x21   : > { %3953 = vmatmul.mubr.msk.f32.gmra.mrb[4].mxu0 %vm233_vm1, %v4681_v41  ;;  %3756 = vmatmul.mubr.msk.f32.gmra.mrb[6].mxu1 %vm233_vm1, %v4610_v23  ;;  %v4783_v22 = vsel %vm607_vm2, %v648_v12, %v649_v13  ;;  %v4797_v36 = vsel %vm607_vm2, %v649_v13, %v651_v18  ;;  %v1026_v45 = vrot.slane %v4591_v15, 2  ;;  %v1028_v52 = vrot.slane %v4600_v19, 2  ;;  %v4847_v12 = vld [vmem:[%s4557_s25 + $0xf8] sm:$0xff]  ;;  %v4890_v6 = vld [vmem:[%s4557_s25 + $0x120] sm:$0xff] }
  0x22   : > { %3955 = vmatprep.mubr.msk.f32.mxu0 %vm233_vm1, %v4685_v43  ;;  %3758 = vmatprep.mubr.msk.f32.mxu1 %vm233_vm1, %v4633_v30  ;;  %v4800_v37 = vsel %vm1014_vm3, %v1020_v24, %v1021_v29  ;;  %v4816_v14 = vsel %vm1014_vm3, %v1021_v29, %v1023_v34  ;;  %v1030_v58 = vrot.slane %v4603_v20, 2  ;;  %v1031_v60 = vrot.slane %v4610_v23, 2  ;;  %v4856_v24 = vld [vmem:[%s4557_s25 + $0x108] sm:$0xff]  ;;  %v4861_v34 = vld [vmem:[%s4557_s25 + $0x10] sm:$0x3] }
  0x23   : > { %5825 = vst [vmem:[#allocation13_spill] sm:$0xff] %v4800_v37  ;;  %5826 = vst [vmem:[#allocation14_spill] sm:$0xff] %v4816_v14  ;;  %v4823_v53 = vsel %vm1014_vm3, %v1025_v44, %v1026_v45  ;;  %v4844_v19 = vsel %vm1014_vm3, %v1026_v45, %v1028_v52  ;;  %v1033_v13 = vrot.slane %v4614_v25, 2  ;;  %v1036_v29 = vrot.slane %v4636_v31, 2  ;;  %v4878_v45 = vld [vmem:[%s4557_s25 + $0x110] sm:$0xff] }
  0x24   : > { %5827 = vst [vmem:[#allocation15_spill] sm:$0xff] %v4823_v53  ;;  %5828 = vst [vmem:[#allocation16_spill] sm:$0xff] %v4844_v19  ;;  %v4853_v18 = vsel %vm1014_vm3, %v1030_v58, %v1031_v60  ;;  %v1018_v25 = vrot.slane %v4861_v34, 2  ;;  %v1038_v52 = vrot.slane %v4662_v38, 2  ;;  %v4906_v38 = vld [vmem:[%s4557_s25 + $0x128] sm:$0xff]  ;;  %v1061_v2 = vrot.slane %v4819_v50, 2 }
  0x25   : > { %3956 = vmatmul.mubr.msk.f32.gmra.mrb[6].mxu0 %vm233_vm1, %v4707_v49  ;;  %3759 = vmatmul.mubr.msk.f32.gmra.mrb[8].mxu1 %vm233_vm1, %v4636_v31  ;;  %5829 = vst [vmem:[#allocation17_spill] sm:$0xff] %v4853_v18  ;;  %v4875_v44 = vsel %vm1014_vm3, %v1031_v60, %v1033_v13  ;;  %v1041_v60 = vrot.slane %v4670_v40, 2  ;;  %v1043_v13 = vrot.slane %v4690_v46, 2 }
  0x26   : > { %3958 = vmatprep.mubr.msk.f32.mxu0 %vm233_vm1, %v4711_v51  ;;  %3761 = vmatprep.mubr.msk.f32.mxu1 %vm233_vm1, %v4667_v39  ;;  %5830 = vst [vmem:[#allocation18_spill] sm:$0xff] %v4875_v44  ;;  %v4884_v58 = vsel %vm1014_vm3, %v1016_v8, %v1018_v25  ;;  %v4903_v8 = vsel %vm1014_vm3, %v1036_v29, %v1038_v52  ;;  %v4913_v25 = vld [vmem:[%s4557_s25 + $0x138] sm:$0xff] }
  0x27   : > { %5832 = vst [vmem:[#allocation20_spill] sm:$0xff] %v4903_v8  ;;  %5834 = vst [vmem:[#allocation22_spill] sm:$0xff] %v4913_v25  ;;  %v4926_v46 = vsel %vm1014_vm3, %v1041_v60, %v1043_v13  ;;  %v1053_v13 = vrot.slane %v4742_v62, 2  ;;  %v1058_v62 = vrot.slane %v4768_v16, 2 }
  0x28   : > { %5835 = vst [vmem:[#allocation23_spill] sm:$0xff] %v4926_v46 }
  0x29   : > { %3959 = vmatmul.mubr.msk.f32.gmra.mrb[8].mxu0 %vm233_vm1, %v4733_v57  ;;  %3762 = vmatmul.mubr.msk.f32.gmra.mrb[10].mxu1 %vm233_vm1, %v4670_v40 }
  0x2a   : > { %3961 = vmatprep.mubr.msk.f32.mxu0 %vm233_vm1, %v4737_v59  ;;  %3764 = vmatprep.mubr.msk.f32.mxu1 %vm233_vm1, %v4693_v47 }
  0x2d   : > { %3962 = vmatmul.mubr.msk.f32.gmra.mrb[10].mxu0 %vm233_vm1, %v4759_v1  ;;  %3765 = vmatmul.mubr.msk.f32.gmra.mrb[12].mxu1 %vm233_vm1, %v4696_v48 }
  0x2e   : > { %3964 = vmatprep.mubr.msk.f32.mxu0 %vm233_vm1, %v4763_v7  ;;  %3767 = vmatprep.mubr.msk.f32.mxu1 %vm233_vm1, %v4719_v55 }
  0x31   : > { %3965 = vmatmul.mubr.msk.f32.gmra.mrb[12].mxu0 %vm233_vm1, %v4779_v17  ;;  %3768 = vmatmul.mubr.msk.f32.gmra.mrb[14].mxu1 %vm233_vm1, %v4722_v56 }
  0x32   : > { %3967 = vmatprep.mubr.msk.f32.mxu0 %vm233_vm1, %v4783_v22  ;;  %3770 = vmatprep.mubr.msk.f32.mxu1 %vm233_vm1, %v4745_v63 }
  0x35   : > { %3968 = vmatmul.mubr.msk.f32.gmra.mrb[14].mxu0 %vm233_vm1, %v4797_v36  ;;  %3771 = vmatmul.mubr.msk.f32.gmra.mrb[16].mxu1 %vm233_vm1, %v4748_v0 }
  0x36   : > { %3996 = vmatprep.mubr.msk.f32.mxu0 %vm233_vm1, %v4800_v37  ;;  %3773 = vmatprep.mubr.msk.f32.mxu1 %vm233_vm1, %v4803_v42  ;;  %v4988_v37 = vld [vmem:[%s4557_s25 + $0xe8] sm:$0x3] }
  0x39   : > { %3997 = vmatmul.mubr.msk.f32.vlgmr.msra.gmra.mrb[0].mxu0 %vm233_vm1, %v4816_v14  ;;  %3774 = vmatmul.mubr.msk.f32.gmra.mrb[18].mxu1 %vm233_vm1, %v4819_v50  ;;  %v1056_v14 = vrot.slane %v4748_v0, 2 }
  0x3a   : > { %4045 = vmatpush3.msk.msra.mxu0 %vm330_vm0, %v4641_v32  ;;  %3999 = vmatprep.mubr.msk.f32.mxu0 %vm233_vm1, %v4823_v53  ;;  %v1035_v32 = vrot.slane %v4633_v30, 2 }
  0x3b   : > { %3776 = vmatprep.mubr.msk.f32.mxu1 %vm233_vm1, %v4828_v61  ;;  %4094 = vmatprep.subr.msk.mxu0 %vm330_vm0, %v4833_v3  ;;  %v4998_v16 = vsel %vm1014_vm3, %v1056_v14, %v1058_v62  ;;  %v1070_v62 = vrot.slane %v4856_v24, 2 }
  0x3c   : > { %v4887_v9 = vsel %vm1014_vm3, %v1035_v32, %v1036_v29  ;;  %v1048_v29 = vrot.slane %v4716_v54, 2  ;;  %5846 = vst [vmem:[#allocation34_spill] sm:$0xff] %v4998_v16 }
  0x3d   : > { %4000 = vmatmul.mubr.msk.f32.gmra.mrb[2].mxu0 %vm233_vm1, %v4844_v19  ;;  %3777 = vmatmul.mubr.msk.f32.gmra.mrb[20].mxu1 %vm233_vm1, %v4847_v12  ;;  %5831 = vst [vmem:[#allocation19_spill] sm:$0xff] %v4887_v9  ;;  %v1050_v19 = vrot.slane %v4719_v55, 2 }
  0x3e   : > { %4002 = vmatprep.mubr.msk.f32.mxu0 %vm233_vm1, %v4853_v18  ;;  %3779 = vmatprep.mubr.msk.f32.mxu1 %vm233_vm1, %v4856_v24  ;;  %v1040_v18 = vrot.slane %v4667_v39, 2 }
  0x40   : > { %v4910_v32 = vsel %vm1014_vm3, %v1040_v18, %v1041_v60  ;;  %v4929_v18 = vld [vmem:[%s4557_s25 + $0x140] sm:$0xff]  ;;  %v608_v60 = vrot.slane %v4560_v4, 1  ;;  %v4961_v4 = vld [vmem:[%s4557_s25 + $0x168] sm:$0xff] }
  0x41   : > { %4003 = vmatmul.mubr.msk.f32.gmra.mrb[4].mxu0 %vm233_vm1, %v4875_v44  ;;  %3780 = vmatmul.mubr.msk.f32.gmra.mrb[22].mxu1 %vm233_vm1, %v4878_v45  ;;  %5833 = vst [vmem:[#allocation21_spill] sm:$0xff] %v4910_v32  ;;  %v1045_v44 = vrot.slane %v4693_v47, 2  ;;  %5836 = vst [vmem:[#allocation24_spill] sm:$0xff] %v4929_v18 }
  0x42   : > { %4005 = vmatprep.mubr.msk.f32.mxu0 %vm233_vm1, %v4887_v9  ;;  %3782 = vmatprep.mubr.msk.f32.mxu1 %vm233_vm1, %v4890_v6  ;;  %v1046_v9 = vrot.slane %v4696_v48, 2  ;;  %5842 = vst [vmem:[#allocation30_spill] sm:$0xff] %v4961_v4 }
  0x44   : > { %v4933_v52 = vsel %vm1014_vm3, %v1045_v44, %v1046_v9  ;;  %v4950_v54 = vsel %vm1014_vm3, %v1046_v9, %v1048_v29  ;;  %v4953_v44 = vld [vmem:[%s4557_s25 + $0x158] sm:$0xff]  ;;  %v4977_v9 = vld [vmem:[%s4557_s25 + $0x170] sm:$0xff] }
  0x45   : > { %4006 = vmatmul.mubr.msk.f32.gmra.mrb[6].mxu0 %vm233_vm1, %v4903_v8  ;;  %3783 = vmatmul.mubr.msk.f32.gmra.mrb[24].mxu1 %vm233_vm1, %v4906_v38  ;;  %5837 = vst [vmem:[#allocation25_spill] sm:$0xff] %v4933_v52  ;;  %v4936_v8 = vld [vmem:[%s4557_s25 + $0x150] sm:$0xff]  ;;  %5839 = vst [vmem:[#allocation27_spill] sm:$0xff] %v4950_v54 }
  0x46   : > { %4008 = vmatprep.mubr.msk.f32.mxu0 %vm233_vm1, %v4910_v32  ;;  %3785 = vmatprep.mubr.msk.f32.mxu1 %vm233_vm1, %v4913_v25  ;;  %5838 = vst [vmem:[#allocation26_spill] sm:$0xff] %v4936_v8  ;;  %v1051_v32 = vrot.slane %v4722_v56, 2  ;;  %5840 = vst [vmem:[#allocation28_spill] sm:$0xff] %v4953_v44 }
  0x47   : > { %5844 = vst [vmem:[#allocation32_spill] sm:$0xff] %v4977_v9 }
  0x48   : > { %v4958_v53 = vsel %vm1014_vm3, %v1050_v19, %v1051_v32  ;;  %v611_v19 = vrot.slane %v4861_v34, 1 }
  0x49   : > { %4009 = vmatmul.mubr.msk.f32.gmra.mrb[8].mxu0 %vm233_vm1, %v4926_v46  ;;  %3786 = vmatmul.mubr.msk.f32.gmra.mrb[26].mxu1 %vm233_vm1, %v4929_v18  ;;  %v609_v46 = vrot.slane %v4563_v5, 1  ;;  %5841 = vst [vmem:[#allocation29_spill] sm:$0xff] %v4958_v53  ;;  %v4974_v5 = vsel %vm1014_vm3, %v1051_v32, %v1053_v13  ;;  %v1063_v32 = vrot.slane %v4988_v37, 2  ;;  %v1066_v13 = vrot.slane %v4847_v12, 2 }
  0x4a   : > { %4011 = vmatprep.mubr.msk.f32.mxu0 %vm233_vm1, %v4933_v52  ;;  %3788 = vmatprep.mubr.msk.f32.mxu1 %vm233_vm1, %v4936_v8  ;;  %v1055_v52 = vrot.slane %v4745_v63, 2  ;;  %5843 = vst [vmem:[#allocation31_spill] sm:$0xff] %v4974_v5 }
  0x4b   : > { %v612_v34 = vsel %vm607_vm2, %v609_v46, %v611_v19  ;;  %v1071_v19 = vrot.slane %v4878_v45, 2 }
  0x4c   : > { %v4982_v29 = vsel %vm1014_vm3, %v1055_v52, %v1056_v14  ;;  %v5023_v14 = vsel %vm1014_vm3, %v1061_v2, %v1063_v32  ;;  %v1075_v32 = vrot.slane %v4890_v6, 2 }
  0x4d   : > { %4012 = vmatmul.mubr.msk.f32.gmra.mrb[10].mxu0 %vm233_vm1, %v4950_v54  ;;  %3789 = vmatmul.mubr.msk.f32.gmra.mrb[28].mxu1 %vm233_vm1, %v4953_v44  ;;  %5845 = vst [vmem:[#allocation33_spill] sm:$0xff] %v4982_v29  ;;  %v610_v54 = vsel %vm607_vm2, %v608_v60, %v609_v46  ;;  %v1065_v60 = vrot.slane %v4828_v61, 2  ;;  %5848 = vst [vmem:[#allocation36_spill] sm:$0xff] %v5023_v14 }
  0x4e   : > { %4014 = vmatprep.mubr.msk.f32.mxu0 %vm233_vm1, %v4958_v53  ;;  %3791 = vmatprep.mubr.msk.f32.mxu1 %vm233_vm1, %v4961_v4  ;;  %v1060_v53 = vrot.slane %v4803_v42, 2 }
  0x4f   : > { %v5029_v46 = vsel %vm1014_vm3, %v1065_v60, %v1066_v13  ;;  %v1076_v60 = vrot.slane %v4906_v38, 2 }
  0x50   : > { %v5003_v52 = vsel %vm1014_vm3, %v1060_v53, %v1061_v2  ;;  %5849 = vst [vmem:[#allocation37_spill] sm:$0xff] %v5029_v46 }
  0x51   : > { %4015 = vmatmul.mubr.msk.f32.gmra.mrb[12].mxu0 %vm233_vm1, %v4974_v5  ;;  %3792 = vmatmul.mubr.msk.f32.gmra.mrb[30].mxu1 %vm233_vm1, %v4977_v9  ;;  %5847 = vst [vmem:[#allocation35_spill] sm:$0xff] %v5003_v52  ;;  %v5008_v5 = vld [vmem:[%s4557_s25 + $0x100] sm:$0x3] }
  0x52   : > { %4017 = vmatprep.mubr.msk.f32.mxu0 %vm233_vm1, %v4982_v29  ;;  %3796 = vmatprep.mubr.msk.f32.mxu1 %vm233_vm1, %v610_v54  ;;  %v5013_v54 = vld [vmem:[%s5737_s1 + $0xc] sm:$0xf]  ;;  %v1068_v53 = vrot.slane %v5008_v5, 2 }
  0x54   : > { %v5047_v2 = vsel %vm1014_vm3, %v1066_v13, %v1068_v53 }
  0x55   : > { %4018 = vmatmul.mubr.msk.f32.gmra.mrb[14].mxu0 %vm233_vm1, %v4998_v16  ;;  %3797 = vmatmul.mubr.msk.f32.vlgmr.msra.gmra.mrb[0].mxu1 %vm233_vm1, %v612_v34  ;;  %5850 = vst [vmem:[#allocation38_spill] sm:$0xff] %v5047_v2  ;;  %v5051_v34 = vsel %vm1014_vm3, %v1070_v62, %v1071_v19  ;;  %v5071_v62 = vsel %vm1014_vm3, %v1075_v32, %v1076_v60 }
  0x56   : > { %3845 = vmatpush3.msk.msra.mxu1 %vm330_vm0, %v4581_v11  ;;  %4020 = vmatprep.mubr.msk.f32.mxu0 %vm233_vm1, %v5003_v52  ;;  %v5034_v11 = vld [vmem:[%s4557_s25 + $0x118] sm:$0x3]  ;;  %5851 = vst [vmem:[#allocation39_spill] sm:$0xff] %v5051_v34  ;;  %5853 = vst [vmem:[#allocation41_spill] sm:$0xff] %v5071_v62 }
  0x57   : > { %3799 = vmatprep.mubr.msk.f32.mxu1 %vm233_vm1, %v4606_v21  ;;  %3894 = vmatprep.subr.msk.mxu1 %vm330_vm0, %v5013_v54  ;;  %v1073_v21 = vrot.slane %v5034_v11, 2 }
  0x59   : > { %4021 = vmatmul.mubr.msk.f32.gmra.mrb[16].mxu0 %vm233_vm1, %v5023_v14  ;;  %3800 = vmatmul.mubr.msk.f32.gmra.mrb[2].mxu1 %vm233_vm1, %v4626_v27  ;;  %v5056_v27 = vld [vmem:[%s4557_s25 + $0x130] sm:$0x3]  ;;  %v5067_v13 = vsel %vm1014_vm3, %v1071_v19, %v1073_v21  ;;  %v5076_v14 = vld [vmem:[%s4557_s25 + $0x148] sm:$0x3] }
  0x5a   : > { %4023 = vmatprep.mubr.msk.f32.mxu0 %vm233_vm1, %v5029_v46  ;;  %3802 = vmatprep.mubr.msk.f32.mxu1 %vm233_vm1, %v4629_v28  ;;  %5852 = vst [vmem:[#allocation40_spill] sm:$0xff] %v5067_v13  ;;  %v1078_v53 = vrot.slane %v5056_v27, 2  ;;  %v1081_v46 = vrot.slane %v4929_v18, 2  ;;  %v1083_v21 = vrot.slane %v5076_v14, 2 }
  0x5c   : > { %v5087_v19 = vsel %vm1014_vm3, %v1076_v60, %v1078_v53 }
  0x5d   : > { %4024 = vmatmul.mubr.msk.f32.gmra.mrb[18].mxu0 %vm233_vm1, %v5047_v2  ;;  %3803 = vmatmul.mubr.msk.f32.gmra.mrb[4].mxu1 %vm233_vm1, %v4651_v33  ;;  %v1080_v2 = vrot.slane %v4913_v25, 2  ;;  %5854 = vst [vmem:[#allocation42_spill] sm:$0xff] %v5087_v19 }
  0x5e   : > { %4026 = vmatprep.mubr.msk.f32.mxu0 %vm233_vm1, %v5051_v34  ;;  %3805 = vmatprep.mubr.msk.f32.mxu1 %vm233_vm1, %v4657_v35  ;;  %v1086_v34 = vrot.slane %v4953_v44, 2  ;;  %v5142_v35 = vld [vmem:[%s4557_s25 + $0x190] sm:$0x3] }
  0x5f   : > { %v5091_v32 = vsel %vm1014_vm3, %v1080_v2, %v1081_v46  ;;  %v5107_v2 = vsel %vm1014_vm3, %v1081_v46, %v1083_v21  ;;  %5859 = vst [vmem:[#allocation47_spill] sm:$0xff] %v5142_v35 }
  0x60   : > { %5855 = vst [vmem:[#allocation43_spill] sm:$0xff] %v5091_v32  ;;  %5856 = vst [vmem:[#allocation44_spill] sm:$0xff] %v5107_v2 }
  0x61   : > { %4027 = vmatmul.mubr.msk.f32.gmra.mrb[20].mxu0 %vm233_vm1, %v5067_v13  ;;  %3806 = vmatmul.mubr.msk.f32.gmra.mrb[6].mxu1 %vm233_vm1, %v4681_v41  ;;  %v1085_v13 = vrot.slane %v4936_v8, 2  ;;  %v5096_v41 = vld [vmem:[%s4557_s25 + $0x160] sm:$0x3] }
  0x62   : > { %4029 = vmatprep.mubr.msk.f32.mxu0 %vm233_vm1, %v5071_v62  ;;  %3808 = vmatprep.mubr.msk.f32.mxu1 %vm233_vm1, %v4685_v43  ;;  %v1088_v60 = vrot.slane %v5096_v41, 2  ;;  %v1091_v62 = vrot.slane %v4977_v9, 2  ;;  %v5119_v43 = vld [vmem:[%s4557_s25 + $0x180] sm:$0xff] }
  0x63   : > { %v5111_v53 = vsel %vm1014_vm3, %v1085_v13, %v1086_v34 }
  0x64   : > { %5857 = vst [vmem:[#allocation45_spill] sm:$0xff] %v5111_v53  ;;  %v5133_v46 = vsel %vm1014_vm3, %v1086_v34, %v1088_v60 }
  0x65   : > { %4030 = vmatmul.mubr.msk.f32.gmra.mrb[22].mxu0 %vm233_vm1, %v5087_v19  ;;  %3809 = vmatmul.mubr.msk.f32.gmra.mrb[8].mxu1 %vm233_vm1, %v4707_v49  ;;  %v1090_v19 = vrot.slane %v4961_v4, 2  ;;  %v5116_v49 = vld [vmem:[%s4557_s25 + $0x178] sm:$0x3]  ;;  %5858 = vst [vmem:[#allocation46_spill] sm:$0xff] %v5133_v46 }
  0x66   : > { %4032 = vmatprep.mubr.msk.f32.mxu0 %vm233_vm1, %v5091_v32  ;;  %3811 = vmatprep.mubr.msk.f32.mxu1 %vm233_vm1, %v4711_v51  ;;  %v5122_v32 = vld [vmem:[%s4557_s25 + $0x188] sm:$0xff]  ;;  %v1093_v13 = vrot.slane %v5116_v49, 2  ;;  %v1961_v51 = vrot.slane %v5119_v43, 2 }
  0x67   : > { %v5137_v21 = vsel %vm1014_vm3, %v1090_v19, %v1091_v62  ;;  %v1964_v19 = vrot.slane %v5142_v35, 2  ;;  %v658_v35 = vrot.slane %v4828_v61, 1 }
  0x68   : > { %v5153_v34 = vsel %vm1014_vm3, %v1091_v62, %v1093_v13 }
  0x69   : > { %4033 = vmatmul.mubr.msk.f32.gmra.mrb[24].mxu0 %vm233_vm1, %v5107_v2  ;;  %3812 = vmatmul.mubr.msk.f32.gmra.mrb[10].mxu1 %vm233_vm1, %v4733_v57  ;;  %v1962_v2 = vrot.slane %v5122_v32, 2  ;;  %5860 = vst [vmem:[#allocation48_spill] sm:$0xff] %v5153_v34 }
  0x6a   : > { %4035 = vmatprep.mubr.msk.f32.mxu0 %vm233_vm1, %v5111_v53  ;;  %3814 = vmatprep.mubr.msk.f32.mxu1 %vm233_vm1, %v4737_v59  ;;  %v653_v53 = vrot.slane %v4803_v42, 1 }
  0x6b   : > { %v5157_v60 = vsel %vm1014_vm3, %v1961_v51, %v1962_v2  ;;  %v5170_v62 = vsel %vm1014_vm3, %v1962_v2, %v1964_v19  ;;  %v656_v51 = vrot.slane %v4988_v37, 1  ;;  %v661_v2 = vrot.slane %v5008_v5, 1 }
  0x6c   : > { %5861 = vst [vmem:[#allocation49_spill] sm:$0xff] %v5157_v60  ;;  %5862 = vst [vmem:[#allocation50_spill] sm:$0xff] %v5170_v62  ;;  %v664_v19 = vrot.slane %v4878_v45, 1  ;;  %v666_v5 = vrot.slane %v5034_v11, 1  ;;  %v671_v11 = vrot.slane %v5056_v27, 1 }
  0x6d   : > { %4036 = vmatmul.mubr.msk.f32.gmra.mrb[26].mxu0 %vm233_vm1, %v5133_v46  ;;  %3815 = vmatmul.mubr.msk.f32.gmra.mrb[12].mxu1 %vm233_vm1, %v4759_v1  ;;  %v654_v46 = vrot.slane %v4819_v50, 1 }
  0x6e   : > { %4038 = vmatprep.mubr.msk.f32.mxu0 %vm233_vm1, %v5137_v21  ;;  %3817 = vmatprep.mubr.msk.f32.mxu1 %vm233_vm1, %v4763_v7 }
  0x6f   : > { %v5174_v13 = vsel %vm607_vm2, %v653_v53, %v654_v46  ;;  %v5187_v37 = vsel %vm607_vm2, %v654_v46, %v656_v51  ;;  %v663_v53 = vrot.slane %v4856_v24, 1  ;;  %v668_v51 = vrot.slane %v4890_v6, 1 }
  0x71   : > { %4039 = vmatmul.mubr.msk.f32.gmra.mrb[28].mxu0 %vm233_vm1, %v5153_v34  ;;  %3818 = vmatmul.mubr.msk.f32.gmra.mrb[14].mxu1 %vm233_vm1, %v4779_v17  ;;  %v659_v34 = vrot.slane %v4847_v12, 1  ;;  %v5215_v46 = vsel %vm607_vm2, %v663_v53, %v664_v19  ;;  %v674_v53 = vrot.slane %v4929_v18, 1 }
  0x72   : > { %4041 = vmatprep.mubr.msk.f32.mxu0 %vm233_vm1, %v5157_v60  ;;  %3820 = vmatprep.mubr.msk.f32.mxu1 %vm233_vm1, %v4783_v22  ;;  %v5198_v60 = vld [vmem:[%s5737_s1 + $0x20] sm:$0xf] }
  0x75   : > { %4042 = vmatmul.mubr.msk.f32.gmra.mrb[30].mxu0 %vm233_vm1, %v5170_v62  ;;  %3821 = vmatmul.mubr.msk.f32.gmra.mrb[16].mxu1 %vm233_vm1, %v4797_v36  ;;  %v5193_v62 = vsel %vm607_vm2, %v658_v35, %v659_v34  ;;  %v5209_v35 = vsel %vm607_vm2, %v659_v34, %v661_v2  ;;  %v673_v2 = vrot.slane %v4913_v25, 1 }
  0x76   : > { %4046 = vmatprep.mubr.msk.f32.mxu0 %vm233_vm1, %v4576_v10  ;;  %3823 = vmatprep.mubr.msk.f32.mxu1 %vm233_vm1, %v5174_v13 }
  0x79   : > { %4047 = vmatmul.mubr.msk.f32.vlgmr.msra.gmra.mrb[0].mxu0 %vm233_vm1, %v4591_v15  ;;  %3824 = vmatmul.mubr.msk.f32.gmra.mrb[18].mxu1 %vm233_vm1, %v5187_v37  ;;  %v669_v15 = vrot.slane %v4906_v38, 1 }
  0x7a   : > { %4095 = vmatpush3.msk.msra.mxu0 %vm330_vm0, %v4833_v3  ;;  %4049 = vmatprep.mubr.msk.f32.mxu0 %vm233_vm1, %v4603_v20  ;;  %v5230_v3 = vsel %vm607_vm2, %v664_v19, %v666_v5  ;;  %v676_v19 = vrot.slane %v5076_v14, 1  ;;  %v5251_v5 = vsel %vm607_vm2, %v673_v2, %v674_v53  ;;  %v681_v14 = vrot.slane %v5096_v41, 1 }
  0x7b   : > { %3826 = vmatprep.mubr.msk.f32.mxu1 %vm233_vm1, %v5193_v62  ;;  %4144 = vmatprep.subr.msk.mxu0 %vm330_vm0, %v5198_v60  ;;  %v5234_v34 = vsel %vm607_vm2, %v668_v51, %v669_v15  ;;  %v5247_v27 = vsel %vm607_vm2, %v669_v15, %v671_v11  ;;  %v678_v51 = vrot.slane %v4936_v8, 1  ;;  %v683_v2 = vrot.slane %v4961_v4, 1 }
  0x7c   : > { %v5264_v15 = vsel %vm607_vm2, %v674_v53, %v676_v19  ;;  %v686_v53 = vrot.slane %v5116_v49, 1  ;;  %v5864_v49 = vld [vmem:[#allocation2_spill] sm:$0xff] }
  0x7d   : > { %4050 = vmatmul.mubr.msk.f32.gmra.mrb[2].mxu0 %vm233_vm1, %v4610_v23  ;;  %3827 = vmatmul.mubr.msk.f32.gmra.mrb[20].mxu1 %vm233_vm1, %v5209_v35 }
  0x7e   : > { %4052 = vmatprep.mubr.msk.f32.mxu0 %vm233_vm1, %v4633_v30  ;;  %3829 = vmatprep.mubr.msk.f32.mxu1 %vm233_vm1, %v5215_v46 }
  0x81   : > { %4053 = vmatmul.mubr.msk.f32.gmra.mrb[4].mxu0 %vm233_vm1, %v4636_v31  ;;  %3830 = vmatmul.mubr.msk.f32.gmra.mrb[22].mxu1 %vm233_vm1, %v5230_v3  ;;  %v679_v31 = vrot.slane %v4953_v44, 1 }
  0x82   : > { %4055 = vmatprep.mubr.msk.f32.mxu0 %vm233_vm1, %v4667_v39  ;;  %3832 = vmatprep.mubr.msk.f32.mxu1 %vm233_vm1, %v5234_v34 }
  0x83   : > { %v5268_v11 = vsel %vm607_vm2, %v678_v51, %v679_v31  ;;  %v5281_v41 = vsel %vm607_vm2, %v679_v31, %v681_v14  ;;  %v5868_v51 = vld [vmem:[#allocation17_spill] sm:$0xff]  ;;  %v5869_v14 = vld [vmem:[#allocation18_spill] sm:$0xff] }
  0x85   : > { %4056 = vmatmul.mubr.msk.f32.gmra.mrb[6].mxu0 %vm233_vm1, %v4670_v40  ;;  %3833 = vmatmul.mubr.msk.f32.gmra.mrb[24].mxu1 %vm233_vm1, %v5247_v27  ;;  %v684_v40 = vrot.slane %v4977_v9, 1 }
  0x86   : > { %4058 = vmatprep.mubr.msk.f32.mxu0 %vm233_vm1, %v4693_v47  ;;  %3835 = vmatprep.mubr.msk.f32.mxu1 %vm233_vm1, %v5251_v5 }
  0x87   : > { %v5285_v19 = vsel %vm607_vm2, %v683_v2, %v684_v40  ;;  %v5296_v31 = vsel %vm607_vm2, %v684_v40, %v686_v53  ;;  %v5863_v40 = vld [vmem:[#allocation13_spill] sm:$0xff]  ;;  %v5870_v2 = vld [vmem:[#allocation19_spill] sm:$0xff]  ;;  %v5871_v53 = vld [vmem:[#allocation20_spill] sm:$0xff] }
  0x89   : > { %4059 = vmatmul.mubr.msk.f32.gmra.mrb[8].mxu0 %vm233_vm1, %v4696_v48  ;;  %3836 = vmatmul.mubr.msk.f32.gmra.mrb[26].mxu1 %vm233_vm1, %v5264_v15 }
  0x8a   : > { %4061 = vmatprep.mubr.msk.f32.mxu0 %vm233_vm1, %v4719_v55  ;;  %3838 = vmatprep.mubr.msk.f32.mxu1 %vm233_vm1, %v5268_v11 }
  0x8d   : > { %4062 = vmatmul.mubr.msk.f32.gmra.mrb[10].mxu0 %vm233_vm1, %v4722_v56  ;;  %3839 = vmatmul.mubr.msk.f32.gmra.mrb[28].mxu1 %vm233_vm1, %v5281_v41 }
  0x8e   : > { %4064 = vmatprep.mubr.msk.f32.mxu0 %vm233_vm1, %v4745_v63  ;;  %3841 = vmatprep.mubr.msk.f32.mxu1 %vm233_vm1, %v5285_v19 }
  0x91   : > { %4065 = vmatmul.mubr.msk.f32.gmra.mrb[12].mxu0 %vm233_vm1, %v4748_v0  ;;  %3842 = vmatmul.mubr.msk.f32.gmra.mrb[30].mxu1 %vm233_vm1, %v5296_v31 }
  0x92   : > { %4067 = vmatprep.mubr.msk.f32.mxu0 %vm233_vm1, %v4803_v42  ;;  %3846 = vmatprep.mubr.msk.f32.mxu1 %vm233_vm1, %v4621_v26  ;;  %v5865_v26 = vld [vmem:[#allocation14_spill] sm:$0xff] }
  0x95   : > { %4068 = vmatmul.mubr.msk.f32.gmra.mrb[14].mxu0 %vm233_vm1, %v4819_v50  ;;  %3847 = vmatmul.mubr.msk.f32.vlgmr.msra.gmra.mrb[0].mxu1 %vm233_vm1, %v4884_v58  ;;  %v5866_v58 = vld [vmem:[#allocation15_spill] sm:$0xff] }
  0x96   : > { %3895 = vmatpush3.msk.msra.mxu1 %vm330_vm0, %v5013_v54  ;;  %4070 = vmatprep.mubr.msk.f32.mxu0 %vm233_vm1, %v4828_v61  ;;  %v5867_v54 = vld [vmem:[#allocation16_spill] sm:$0xff] }
  0x97   : > { %3849 = vmatprep.mubr.msk.f32.mxu1 %vm233_vm1, %v5863_v40  ;;  %4194 = vmatprep.subr.msk.mxu1 %vm330_vm0, %v5864_v49  ;;  %v5872_v40 = vld [vmem:[#allocation21_spill] sm:$0xff] }
  0x99   : > { %4071 = vmatmul.mubr.msk.f32.gmra.mrb[16].mxu0 %vm233_vm1, %v4847_v12  ;;  %3850 = vmatmul.mubr.msk.f32.gmra.mrb[2].mxu1 %vm233_vm1, %v5865_v26  ;;  %v5873_v26 = vld [vmem:[#allocation23_spill] sm:$0xff] }
  0x9a   : > { %4073 = vmatprep.mubr.msk.f32.mxu0 %vm233_vm1, %v4856_v24  ;;  %3852 = vmatprep.mubr.msk.f32.mxu1 %vm233_vm1, %v5866_v58 }
  0x9d   : > { %4074 = vmatmul.mubr.msk.f32.gmra.mrb[18].mxu0 %vm233_vm1, %v4878_v45  ;;  %3853 = vmatmul.mubr.msk.f32.gmra.mrb[4].mxu1 %vm233_vm1, %v5867_v54 }
  0x9e   : > { %4076 = vmatprep.mubr.msk.f32.mxu0 %vm233_vm1, %v4890_v6  ;;  %3855 = vmatprep.mubr.msk.f32.mxu1 %vm233_vm1, %v5868_v51 }
  0xa1   : > { %4077 = vmatmul.mubr.msk.f32.gmra.mrb[20].mxu0 %vm233_vm1, %v4906_v38  ;;  %3856 = vmatmul.mubr.msk.f32.gmra.mrb[6].mxu1 %vm233_vm1, %v5869_v14 }
  0xa2   : > { %4079 = vmatprep.mubr.msk.f32.mxu0 %vm233_vm1, %v4913_v25  ;;  %3858 = vmatprep.mubr.msk.f32.mxu1 %vm233_vm1, %v5870_v2  ;;  %v5875_v25 = vld [vmem:[#allocation27_spill] sm:$0xff] }
  0xa5   : > { %4080 = vmatmul.mubr.msk.f32.gmra.mrb[22].mxu0 %vm233_vm1, %v4929_v18  ;;  %3859 = vmatmul.mubr.msk.f32.gmra.mrb[8].mxu1 %vm233_vm1, %v5871_v53  ;;  %v5874_v18 = vld [vmem:[#allocation25_spill] sm:$0xff] }
  0xa6   : > { %4082 = vmatprep.mubr.msk.f32.mxu0 %vm233_vm1, %v4936_v8  ;;  %3861 = vmatprep.mubr.msk.f32.mxu1 %vm233_vm1, %v5872_v40  ;;  %v5876_v8 = vld [vmem:[#allocation29_spill] sm:$0xff] }
  0xa9   : > { %4083 = vmatmul.mubr.msk.f32.gmra.mrb[24].mxu0 %vm233_vm1, %v4953_v44  ;;  %3862 = vmatmul.mubr.msk.f32.gmra.mrb[10].mxu1 %vm233_vm1, %v5873_v26  ;;  %v5367_v44 = vld [vmem:[%s4557_s25 + $0x198] sm:$0xff] }
  0xaa   : > { %4085 = vmatprep.mubr.msk.f32.mxu0 %vm233_vm1, %v4961_v4  ;;  %3864 = vmatprep.mubr.msk.f32.mxu1 %vm233_vm1, %v5874_v18  ;;  %v5877_v4 = vld [vmem:[#allocation31_spill] sm:$0xff] }
  0xad   : > { %4086 = vmatmul.mubr.msk.f32.gmra.mrb[26].mxu0 %vm233_vm1, %v4977_v9  ;;  %3865 = vmatmul.mubr.msk.f32.gmra.mrb[12].mxu1 %vm233_vm1, %v5875_v25  ;;  %v5378_v9 = vld [vmem:[%s4557_s25 + $0x1a0] sm:$0xff] }
  0xae   : > { %4088 = vmatprep.mubr.msk.f32.mxu0 %vm233_vm1, %v5119_v43  ;;  %3867 = vmatprep.mubr.msk.f32.mxu1 %vm233_vm1, %v5876_v8  ;;  %v5880_v8 = vld [vmem:[#allocation37_spill] sm:$0xff] }
  0xb1   : > { %4089 = vmatmul.mubr.msk.f32.gmra.mrb[28].mxu0 %vm233_vm1, %v5122_v32  ;;  %3868 = vmatmul.mubr.msk.f32.gmra.mrb[14].mxu1 %vm233_vm1, %v5877_v4  ;;  %v5878_v4 = vld [vmem:[#allocation36_spill] sm:$0xff] }
  0xb2   : > { %4091 = vmatprep.mubr.msk.f32.mxu0 %vm233_vm1, %v5367_v44  ;;  %3870 = vmatprep.mubr.msk.f32.mxu1 %vm233_vm1, %v4982_v29  ;;  %v5879_v29 = vld [vmem:[#allocation7_spill] sm:$0xff] }
  0xb5   : > { %4092 = vmatmul.mubr.msk.f32.gmra.mrb[30].mxu0 %vm233_vm1, %v5378_v9  ;;  %3871 = vmatmul.mubr.msk.f32.gmra.mrb[16].mxu1 %vm233_vm1, %v4998_v16  ;;  %v5881_v16 = vld [vmem:[#allocation9_spill] sm:$0xff] }
  0xb6   : > { %4096 = vmatprep.mubr.msk.f32.mxu0 %vm233_vm1, %v4629_v28  ;;  %3873 = vmatprep.mubr.msk.f32.mxu1 %vm233_vm1, %v5003_v52  ;;  %v5882_v28 = vld [vmem:[#allocation38_spill] sm:$0xff] }
  0xb7   : > { %v5883_v52 = vld [vmem:[#allocation10_spill] sm:$0xff] }
  0xb9   : > { %4097 = vmatmul.mubr.msk.f32.vlgmr.msra.gmra.mrb[0].mxu0 %vm233_vm1, %v4651_v33  ;;  %3874 = vmatmul.mubr.msk.f32.gmra.mrb[18].mxu1 %vm233_vm1, %v5878_v4  ;;  %v5884_v33 = vld [vmem:[#allocation39_spill] sm:$0xff] }
  0xba   : > { %4145 = vmatpush3.msk.msra.mxu0 %vm330_vm0, %v5198_v60  ;;  %4099 = vmatprep.mubr.msk.f32.mxu0 %vm233_vm1, %v5879_v29  ;;  %v5885_v4 = vld [vmem:[#allocation11_spill] sm:$0xff]  ;;  %v5886_v60 = vld [vmem:[#allocation40_spill] sm:$0xff] }
  0xbb   : > { %3876 = vmatprep.mubr.msk.f32.mxu1 %vm233_vm1, %v5880_v8  ;;  %v5887_v29 = vld [vmem:[#allocation12_spill] sm:$0xff]  ;;  %v5888_v8 = vld [vmem:[#allocation41_spill] sm:$0xff] }
  0xbd   : > { %4100 = vmatmul.mubr.msk.f32.gmra.mrb[2].mxu0 %vm233_vm1, %v5881_v16  ;;  %3877 = vmatmul.mubr.msk.f32.gmra.mrb[20].mxu1 %vm233_vm1, %v5882_v28  ;;  %v5889_v16 = vld [vmem:[#allocation42_spill] sm:$0xff] }
  0xbe   : > { %4102 = vmatprep.mubr.msk.f32.mxu0 %vm233_vm1, %v5883_v52  ;;  %3879 = vmatprep.mubr.msk.f32.mxu1 %vm233_vm1, %v5884_v33  ;;  %v5890_v52 = vld [vmem:[#allocation43_spill] sm:$0xff] }
  0xc1   : > { %4103 = vmatmul.mubr.msk.f32.gmra.mrb[4].mxu0 %vm233_vm1, %v5885_v4  ;;  %3880 = vmatmul.mubr.msk.f32.gmra.mrb[22].mxu1 %vm233_vm1, %v5886_v60  ;;  %v5891_v4 = vld [vmem:[#allocation44_spill] sm:$0xff] }
  0xc2   : > { %4105 = vmatprep.mubr.msk.f32.mxu0 %vm233_vm1, %v5887_v29  ;;  %3882 = vmatprep.mubr.msk.f32.mxu1 %vm233_vm1, %v5888_v8  ;;  %v5892_v29 = vld [vmem:[#allocation45_spill] sm:$0xff] }
  0xc5   : > { %4106 = vmatmul.mubr.msk.f32.gmra.mrb[6].mxu0 %vm233_vm1, %v4733_v57  ;;  %3883 = vmatmul.mubr.msk.f32.gmra.mrb[24].mxu1 %vm233_vm1, %v5889_v16  ;;  %v5893_v57 = vld [vmem:[#allocation46_spill] sm:$0xff] }
  0xc6   : > { %4108 = vmatprep.mubr.msk.f32.mxu0 %vm233_vm1, %v4737_v59  ;;  %3885 = vmatprep.mubr.msk.f32.mxu1 %vm233_vm1, %v5890_v52  ;;  %v5894_v59 = vld [vmem:[#allocation48_spill] sm:$0xff] }
  0xc9   : > { %4109 = vmatmul.mubr.msk.f32.gmra.mrb[8].mxu0 %vm233_vm1, %v4759_v1  ;;  %3886 = vmatmul.mubr.msk.f32.gmra.mrb[26].mxu1 %vm233_vm1, %v5891_v4  ;;  %v5895_v1 = vld [vmem:[#allocation3_spill] sm:$0xff] }
  0xca   : > { %4111 = vmatprep.mubr.msk.f32.mxu0 %vm233_vm1, %v4763_v7  ;;  %3888 = vmatprep.mubr.msk.f32.mxu1 %vm233_vm1, %v5892_v29  ;;  %v5896_v7 = vld [vmem:[#allocation4_spill] sm:$0xff] }
  0xcd   : > { %4112 = vmatmul.mubr.msk.f32.gmra.mrb[10].mxu0 %vm233_vm1, %v4779_v17  ;;  %3889 = vmatmul.mubr.msk.f32.gmra.mrb[28].mxu1 %vm233_vm1, %v5893_v57  ;;  %v5897_v17 = vld [vmem:[#allocation5_spill] sm:$0xff] }
  0xce   : > { %4114 = vmatprep.mubr.msk.f32.mxu0 %vm233_vm1, %v4783_v22  ;;  %3891 = vmatprep.mubr.msk.f32.mxu1 %vm233_vm1, %v5137_v21 }
  0xd1   : > { %4115 = vmatmul.mubr.msk.f32.gmra.mrb[12].mxu0 %vm233_vm1, %v4797_v36  ;;  %3892 = vmatmul.mubr.msk.f32.gmra.mrb[30].mxu1 %vm233_vm1, %v5894_v59  ;;  %v2502_v36 = vrot.slane %v5378_v9, 1 }
  0xd2   : > { %4117 = vmatprep.mubr.msk.f32.mxu0 %vm233_vm1, %v5174_v13  ;;  %3896 = vmatprep.mubr.msk.f32.mxu1 %vm233_vm1, %v5895_v1  ;;  %v5505_v1 = vld [vmem:[%s4557_s25 + $0x1a8] sm:$0x3] }
  0xd5   : > { %4118 = vmatmul.mubr.msk.f32.gmra.mrb[14].mxu0 %vm233_vm1, %v5187_v37  ;;  %3897 = vmatmul.mubr.msk.f32.vlgmr.msra.gmra.mrb[0].mxu1 %vm233_vm1, %v5896_v7 }
  0xd6   : > { %4195 = vmatpush3.msk.msra.mxu1 %vm330_vm0, %v5864_v49  ;;  %4120 = vmatprep.mubr.msk.f32.mxu0 %vm233_vm1, %v5193_v62 }
  0xd7   : > { %3899 = vmatprep.mubr.msk.f32.mxu1 %vm233_vm1, %v4576_v10  ;;  %v5898_v10 = vld [vmem:[#allocation6_spill] sm:$0xff] }
  0xd9   : > { %4121 = vmatmul.mubr.msk.f32.gmra.mrb[16].mxu0 %vm233_vm1, %v5209_v35  ;;  %3900 = vmatmul.mubr.msk.f32.gmra.mrb[2].mxu1 %vm233_vm1, %v5897_v17 }
  0xda   : > { %4123 = vmatprep.mubr.msk.f32.mxu0 %vm233_vm1, %v5215_v46  ;;  %3902 = vmatprep.mubr.msk.f32.mxu1 %vm233_vm1, %v4603_v20  ;;  %v5899_v20 = vld [vmem:[#allocation8_spill] sm:$0xff] }
  0xdd   : > { %4124 = vmatmul.mubr.msk.f32.gmra.mrb[18].mxu0 %vm233_vm1, %v5230_v3  ;;  %3903 = vmatmul.mubr.msk.f32.gmra.mrb[4].mxu1 %vm233_vm1, %v4610_v23  ;;  %v1690_v23 = vrot.slane %v5119_v43, 1 }
  0xde   : > { %4126 = vmatprep.mubr.msk.f32.mxu0 %vm233_vm1, %v5234_v34  ;;  %3905 = vmatprep.mubr.msk.f32.mxu1 %vm233_vm1, %v4633_v30  ;;  %v1691_v30 = vrot.slane %v5122_v32, 1 }
  0xe0   : > { %v5502_v49 = vsel %vm607_vm2, %v1690_v23, %v1691_v30 }
  0xe1   : > { %4127 = vmatmul.mubr.msk.f32.gmra.mrb[20].mxu0 %vm233_vm1, %v5247_v27  ;;  %3906 = vmatmul.mubr.msk.f32.gmra.mrb[6].mxu1 %vm233_vm1, %v5898_v10 }
  0xe2   : > { %4129 = vmatprep.mubr.msk.f32.mxu0 %vm233_vm1, %v5251_v5  ;;  %3908 = vmatprep.mubr.msk.f32.mxu1 %vm233_vm1, %v4667_v39  ;;  %v5900_v39 = vld [vmem:[#allocation47_spill] sm:$0xff] }
  0xe3   : > { %v1693_v22 = vrot.slane %v5900_v39, 1 }
  0xe5   : > { %4130 = vmatmul.mubr.msk.f32.gmra.mrb[22].mxu0 %vm233_vm1, %v5264_v15  ;;  %3909 = vmatmul.mubr.msk.f32.gmra.mrb[8].mxu1 %vm233_vm1, %v5899_v20 }
  0xe6   : > { %4132 = vmatprep.mubr.msk.f32.mxu0 %vm233_vm1, %v5268_v11  ;;  %3911 = vmatprep.mubr.msk.f32.mxu1 %vm233_vm1, %v4693_v47  ;;  %v2501_v47 = vrot.slane %v5367_v44, 1 }
  0xe8   : > { %v2503_v7 = vsel %vm607_vm2, %v2501_v47, %v2502_v36 }
  0xe9   : > { %4133 = vmatmul.mubr.msk.f32.gmra.mrb[24].mxu0 %vm233_vm1, %v5281_v41  ;;  %3912 = vmatmul.mubr.msk.f32.gmra.mrb[10].mxu1 %vm233_vm1, %v4696_v48  ;;  %v5516_v48 = vsel %vm607_vm2, %v1691_v30, %v1693_v22 }
  0xea   : > { %4135 = vmatprep.mubr.msk.f32.mxu0 %vm233_vm1, %v5285_v19  ;;  %3914 = vmatprep.mubr.msk.f32.mxu1 %vm233_vm1, %v4719_v55  ;;  %v2504_v55 = vrot.slane %v5505_v1, 1 }
  0xed   : > { %4136 = vmatmul.mubr.msk.f32.gmra.mrb[26].mxu0 %vm233_vm1, %v5296_v31  ;;  %3915 = vmatmul.mubr.msk.f32.gmra.mrb[12].mxu1 %vm233_vm1, %v4722_v56  ;;  %v2505_v56 = vsel %vm607_vm2, %v2502_v36, %v2504_v55 }
  0xee   : > { %4138 = vmatprep.mubr.msk.f32.mxu0 %vm233_vm1, %v5502_v49  ;;  %3917 = vmatprep.mubr.msk.f32.mxu1 %vm233_vm1, %v4745_v63  ;;  %v5901_v63 = vld [vmem:[#allocation22_spill] sm:$0xff] }
  0xf1   : > { %4139 = vmatmul.mubr.msk.f32.gmra.mrb[28].mxu0 %vm233_vm1, %v5516_v48  ;;  %3918 = vmatmul.mubr.msk.f32.gmra.mrb[14].mxu1 %vm233_vm1, %v4748_v0  ;;  %v5902_v0 = vld [vmem:[#allocation24_spill] sm:$0xff] }
  0xf2   : > { %4141 = vmatprep.mubr.msk.f32.mxu0 %vm233_vm1, %v2503_v7  ;;  %3920 = vmatprep.mubr.msk.f32.mxu1 %vm233_vm1, %v4803_v42  ;;  %v5904_v42 = vld [vmem:[#allocation28_spill] sm:$0xff] }
  0xf5   : > { %4142 = vmatmul.mubr.msk.f32.gmra.mrb[30].mxu0 %vm233_vm1, %v2505_v56  ;;  %3921 = vmatmul.mubr.msk.f32.gmra.mrb[16].mxu1 %vm233_vm1, %v4819_v50  ;;  %v5905_v50 = vld [vmem:[#allocation29_spill] sm:$0xff] }
  0xf6   : > { %4146 = vmatprep.mubr.msk.f32.mxu0 %vm233_vm1, %v5866_v58  ;;  %3923 = vmatprep.mubr.msk.f32.mxu1 %vm233_vm1, %v4828_v61  ;;  %v5906_v61 = vld [vmem:[#allocation30_spill] sm:$0xff]  ;;  %v5913_v58 = vld [vmem:[#allocation37_spill] sm:$0xff] }
  0xf9   : > { %4147 = vmatmul.mubr.msk.f32.vlgmr.msra.gmra.mrb[0].mxu0 %vm233_vm1, %v5867_v54  ;;  %3924 = vmatmul.mubr.msk.f32.gmra.mrb[18].mxu1 %vm233_vm1, %v4847_v12  ;;  %v5907_v12 = vld [vmem:[#allocation31_spill] sm:$0xff] }
  0xfa   : > { %4149 = vmatprep.mubr.msk.f32.mxu0 %vm233_vm1, %v5868_v51  ;;  %3926 = vmatprep.mubr.msk.f32.mxu1 %vm233_vm1, %v4856_v24  ;;  %v5908_v24 = vld [vmem:[#allocation32_spill] sm:$0xff] }
  0xfd   : > { %4150 = vmatmul.mubr.msk.f32.gmra.mrb[2].mxu0 %vm233_vm1, %v5869_v14  ;;  %3927 = vmatmul.mubr.msk.f32.gmra.mrb[20].mxu1 %vm233_vm1, %v4878_v45  ;;  %v5909_v45 = vld [vmem:[#allocation33_spill] sm:$0xff] }
  0xfe   : > { %4152 = vmatprep.mubr.msk.f32.mxu0 %vm233_vm1, %v5870_v2  ;;  %3929 = vmatprep.mubr.msk.f32.mxu1 %vm233_vm1, %v4890_v6  ;;  %v5903_v6 = vld [vmem:[#allocation26_spill] sm:$0xff] }
  0xff   : > { %v5661_v2 = vld [vmem:[%s5738_s2] ss:$0 sm:$0xff] }
 0x101   : > { %4153 = vmatmul.mubr.msk.f32.gmra.mrb[4].mxu0 %vm233_vm1, %v5871_v53  ;;  %3930 = vmatmul.mubr.msk.f32.gmra.mrb[22].mxu1 %vm233_vm1, %v4906_v38  ;;  %v5910_v38 = vld [vmem:[#allocation34_spill] sm:$0xff] }
 0x102   : > { %4155 = vmatprep.mubr.msk.f32.mxu0 %vm233_vm1, %v5872_v40  ;;  %3932 = vmatprep.mubr.msk.f32.mxu1 %vm233_vm1, %v5901_v63 }
 0x105   : > { %4156 = vmatmul.mubr.msk.f32.gmra.mrb[6].mxu0 %vm233_vm1, %v5873_v26  ;;  %3933 = vmatmul.mubr.msk.f32.gmra.mrb[24].mxu1 %vm233_vm1, %v5902_v0 }
 0x106   : > { %4158 = vmatprep.mubr.msk.f32.mxu0 %vm233_vm1, %v5874_v18  ;;  %3935 = vmatprep.mubr.msk.f32.mxu1 %vm233_vm1, %v5903_v6  ;;  %v5912_v18 = vld [vmem:[#allocation36_spill] sm:$0xff] }
 0x109   : > { %4159 = vmatmul.mubr.msk.f32.gmra.mrb[8].mxu0 %vm233_vm1, %v5875_v25  ;;  %3936 = vmatmul.mubr.msk.f32.gmra.mrb[26].mxu1 %vm233_vm1, %v5904_v42  ;;  %v5911_v25 = vld [vmem:[#allocation35_spill] sm:$0xff] }
 0x10a   : > { %4161 = vmatprep.mubr.msk.f32.mxu0 %vm233_vm1, %v5905_v50  ;;  %3938 = vmatprep.mubr.msk.f32.mxu1 %vm233_vm1, %v5906_v61 }
 0x10d   : > { %4162 = vmatmul.mubr.msk.f32.gmra.mrb[10].mxu0 %vm233_vm1, %v5907_v12  ;;  %3939 = vmatmul.mubr.msk.f32.gmra.mrb[28].mxu1 %vm233_vm1, %v5908_v24 }
 0x10e   : > { %4164 = vmatprep.mubr.msk.f32.mxu0 %vm233_vm1, %v5909_v45  ;;  %3941 = vmatprep.mubr.msk.f32.mxu1 %vm233_vm1, %v5119_v43  ;;  %v2772_v43 = vrot.slane %v5367_v44, 2 }
 0x111   : > { %4165 = vmatmul.mubr.msk.f32.gmra.mrb[12].mxu0 %vm233_vm1, %v5910_v38  ;;  %3942 = vmatmul.mubr.msk.f32.gmra.mrb[30].mxu1 %vm233_vm1, %v5122_v32  ;;  %v5914_v32 = vld [vmem:[#allocation49_spill] sm:$0xff] }
 0x112   : > { %4167 = vmatprep.mubr.msk.f32.mxu0 %vm233_vm1, %v5911_v25  ;;  %3970 = vmatprep.mubr.msk.f32.mxu1 %vm233_vm1, %v5174_v13  ;;  %v5915_v13 = vld [vmem:[#allocation50_spill] sm:$0xff] }
 0x115   : > { %4168 = vmatmul.mubr.msk.f32.gmra.mrb[14].mxu0 %vm233_vm1, %v5912_v18  ;;  %3971 = vmatmul.mubr.msk.f32.vlgmr.msra.gmra.mrb[16].mxu1 %vm233_vm1, %v5187_v37 }
 0x116   : > { %4170 = vmatprep.mubr.msk.f32.mxu0 %vm233_vm1, %v5913_v58  ;;  %3973 = vmatprep.mubr.msk.f32.mxu1 %vm233_vm1, %v5193_v62 }
 0x119   : > { %4171 = vmatmul.mubr.msk.f32.gmra.mrb[16].mxu0 %vm233_vm1, %v5882_v28  ;;  %3974 = vmatmul.mubr.msk.f32.gmra.mrb[18].mxu1 %vm233_vm1, %v5209_v35 }
 0x11a   : > { %4173 = vmatprep.mubr.msk.f32.mxu0 %vm233_vm1, %v5884_v33  ;;  %3976 = vmatprep.mubr.msk.f32.mxu1 %vm233_vm1, %v5215_v46 }
 0x11d   : > { %4174 = vmatmul.mubr.msk.f32.gmra.mrb[18].mxu0 %vm233_vm1, %v5886_v60  ;;  %3977 = vmatmul.mubr.msk.f32.gmra.mrb[20].mxu1 %vm233_vm1, %v5230_v3 }
 0x11e   : > { %4176 = vmatprep.mubr.msk.f32.mxu0 %vm233_vm1, %v5888_v8  ;;  %3979 = vmatprep.mubr.msk.f32.mxu1 %vm233_vm1, %v5234_v34  ;;  %v2773_v8 = vrot.slane %v5378_v9, 2 }
 0x120   : > { %v2774_v62 = vsel %vm1014_vm3, %v2772_v43, %v2773_v8 }
 0x121   : > { %4177 = vmatmul.mubr.msk.f32.gmra.mrb[20].mxu0 %vm233_vm1, %v5889_v16  ;;  %3980 = vmatmul.mubr.msk.f32.gmra.mrb[22].mxu1 %vm233_vm1, %v5247_v27 }
 0x122   : > { %4179 = vmatprep.mubr.msk.f32.mxu0 %vm233_vm1, %v5890_v52  ;;  %3982 = vmatprep.mubr.msk.f32.mxu1 %vm233_vm1, %v5251_v5 }
 0x125   : > { %4180 = vmatmul.mubr.msk.f32.gmra.mrb[22].mxu0 %vm233_vm1, %v5891_v4  ;;  %3983 = vmatmul.mubr.msk.f32.gmra.mrb[24].mxu1 %vm233_vm1, %v5264_v15 }
 0x126   : > { %4182 = vmatprep.mubr.msk.f32.mxu0 %vm233_vm1, %v5892_v29  ;;  %3985 = vmatprep.mubr.msk.f32.mxu1 %vm233_vm1, %v5268_v11 }
 0x129   : > { %4183 = vmatmul.mubr.msk.f32.gmra.mrb[24].mxu0 %vm233_vm1, %v5893_v57  ;;  %3986 = vmatmul.mubr.msk.f32.gmra.mrb[26].mxu1 %vm233_vm1, %v5281_v41 }
 0x12a   : > { %4185 = vmatprep.mubr.msk.f32.mxu0 %vm233_vm1, %v5137_v21  ;;  %3988 = vmatprep.mubr.msk.f32.mxu1 %vm233_vm1, %v5285_v19  ;;  %v2775_v21 = vrot.slane %v5505_v1, 2 }
 0x12c   : > { %v2776_v44 = vsel %vm1014_vm3, %v2773_v8, %v2775_v21 }
 0x12d   : > { %4186 = vmatmul.mubr.msk.f32.gmra.mrb[26].mxu0 %vm233_vm1, %v5894_v59  ;;  %3989 = vmatmul.mubr.msk.f32.gmra.mrb[28].mxu1 %vm233_vm1, %v5296_v31 }
 0x12e   : > { %4188 = vmatprep.mubr.msk.f32.mxu0 %vm233_vm1, %v5914_v32  ;;  %3991 = vmatprep.mubr.msk.f32.mxu1 %vm233_vm1, %v5502_v49 }
 0x131   : > { %4189 = vmatmul.mubr.msk.f32.gmra.mrb[28].mxu0 %vm233_vm1, %v5915_v13  ;;  %3992 = vmatmul.mubr.msk.f32.gmra.mrb[30].mxu1 %vm233_vm1, %v5516_v48 }
 0x132   : > { %4191 = vmatprep.mubr.msk.f32.mxu0 %vm233_vm1, %v2774_v62 }
 0x135   : > { %4192 = vmatmul.mubr.msk.f32.gmra.mrb[30].mxu0 %vm233_vm1, %v2776_v44 }
 0x1a8   : > { %v3898_v9 = vpop.f32.mrb[0].mxu1 }
 0x1a9   : > { %v1498_v37 = vpop.f32.mrb[1].mxu1  ;;  %v4196_v53 = vadd.f32 %v3898_v9, %v5661_v2 }
 0x1aa   : > { %v4198_v40 = vadd.f32 %v5661_v2, %v1498_v37 }
 0x1ac   : > { %v3901_v35 = vpop.f32.mrb[2].mxu1 }
 0x1ad   : > { %v1508_v46 = vpop.f32.mrb[3].mxu1  ;;  %v4200_v16 = vadd.f32 %v3901_v35, %v5661_v2 }
 0x1ae   : > { %v4202_v52 = vadd.f32 %v5661_v2, %v1508_v46 }
 0x1b0   : > { %v3904_v3 = vpop.f32.mrb[4].mxu1 }
 0x1b1   : > { %v1518_v34 = vpop.f32.mrb[5].mxu1  ;;  %v4204_v17 = vadd.f32 %v3904_v3, %v5661_v2 }
 0x1b2   : > { %v4206_v10 = vadd.f32 %v5661_v2, %v1518_v34 }
 0x1b4   : > { %v3907_v27 = vpop.f32.mrb[6].mxu1 }
 0x1b5   : > { %v1528_v5 = vpop.f32.mrb[7].mxu1  ;;  %v4208_v22 = vadd.f32 %v3907_v27, %v5661_v2 }
 0x1b6   : > { %v4210_v47 = vadd.f32 %v5661_v2, %v1528_v5 }
 0x1b8   : > { %v3910_v15 = vpop.f32.mrb[8].mxu1 }
 0x1b9   : > { %v1538_v11 = vpop.f32.mrb[9].mxu1  ;;  %v4212_v55 = vadd.f32 %v3910_v15, %v5661_v2 }
 0x1ba   : > { %v4214_v7 = vadd.f32 %v5661_v2, %v1538_v11 }
 0x1bc   : > { %v3913_v41 = vpop.f32.mrb[10].mxu1 }
 0x1bd   : > { %v1548_v19 = vpop.f32.mrb[11].mxu1  ;;  %v4216_v42 = vadd.f32 %v3913_v41, %v5661_v2 }
 0x1be   : > { %v4218_v50 = vadd.f32 %v5661_v2, %v1548_v19 }
 0x1c0   : > { %v3916_v31 = vpop.f32.mrb[12].mxu1 }
 0x1c1   : > { %v1558_v54 = vpop.f32.mrb[13].mxu1  ;;  %v4220_v38 = vadd.f32 %v3916_v31, %v5661_v2 }
 0x1c2   : > { %v4222_v25 = vadd.f32 %v5661_v2, %v1558_v54 }
 0x1c4   : > { %v3919_v51 = vpop.f32.mrb[14].mxu1 }
 0x1c5   : > { %v1568_v14 = vpop.f32.mrb[15].mxu1  ;;  %v4224_v32 = vadd.f32 %v3919_v51, %v5661_v2 }
 0x1c6   : > { %v4226_v21 = vadd.f32 %v5661_v2, %v1568_v14 }
 0x1cc   : > { %v4148_v26 = vpop.f32.mrb[0].mxu0 }
 0x1cd   : > { %v4197_v28 = vadd.f32 %v4196_v53, %v4148_v26  ;;  %v2852_v33 = vpop.f32.mrb[1].mxu0 }
 0x1ce   : > { %v4199_v60 = vadd.f32 %v4198_v40, %v2852_v33 }
 0x1cf   : > { %3044 = vst [vmem:[%s5669_s16 + $0x8] sm:$0xff] %v4197_v28 }
 0x1d0   : > { %3043 = vst [vmem:[%s5669_s16] sm:$0xff] %v4199_v60  ;;  %v4151_v4 = vpop.f32.mrb[2].mxu0 }
 0x1d1   : > { %v4201_v29 = vadd.f32 %v4200_v16, %v4151_v4  ;;  %v2862_v57 = vpop.f32.mrb[3].mxu0 }
 0x1d2   : > { %v4203_v59 = vadd.f32 %v4202_v52, %v2862_v57 }
 0x1d3   : > { %3046 = vst [vmem:[%s5669_s16 + $0x18] sm:$0xff] %v4201_v29 }
 0x1d4   : > { %3045 = vst [vmem:[%s5669_s16 + $0x10] sm:$0xff] %v4203_v59  ;;  %v4154_v20 = vpop.f32.mrb[4].mxu0 }
 0x1d5   : > { %v4205_v23 = vadd.f32 %v4204_v17, %v4154_v20  ;;  %v2872_v30 = vpop.f32.mrb[5].mxu0 }
 0x1d6   : > { %v4207_v39 = vadd.f32 %v4206_v10, %v2872_v30 }
 0x1d7   : > { %3048 = vst [vmem:[%s5669_s16 + $0x28] sm:$0xff] %v4205_v23 }
 0x1d8   : > { %3047 = vst [vmem:[%s5669_s16 + $0x20] sm:$0xff] %v4207_v39  ;;  %v4157_v36 = vpop.f32.mrb[6].mxu0 }
 0x1d9   : > { %v4209_v49 = vadd.f32 %v4208_v22, %v4157_v36  ;;  %v2882_v1 = vpop.f32.mrb[7].mxu0 }
 0x1da   : > { %v4211_v48 = vadd.f32 %v4210_v47, %v2882_v1 }
 0x1db   : > { %3050 = vst [vmem:[%s5669_s16 + $0x38] sm:$0xff] %v4209_v49 }
 0x1dc   : > { %3049 = vst [vmem:[%s5669_s16 + $0x30] sm:$0xff] %v4211_v48  ;;  %v4160_v56 = vpop.f32.mrb[8].mxu0 }
 0x1dd   : > { %v4213_v63 = vadd.f32 %v4212_v55, %v4160_v56  ;;  %v2892_v0 = vpop.f32.mrb[9].mxu0 }
 0x1de   : > { %v4215_v6 = vadd.f32 %v4214_v7, %v2892_v0 }
 0x1df   : > { %3052 = vst [vmem:[%s5669_s16 + $0x48] sm:$0xff] %v4213_v63 }
 0x1e0   : > { %3051 = vst [vmem:[%s5669_s16 + $0x40] sm:$0xff] %v4215_v6  ;;  %v4163_v61 = vpop.f32.mrb[10].mxu0 }
 0x1e1   : > { %v4217_v12 = vadd.f32 %v4216_v42, %v4163_v61  ;;  %v2902_v24 = vpop.f32.mrb[11].mxu0 }
 0x1e2   : > { %v4219_v45 = vadd.f32 %v4218_v50, %v2902_v24 }
 0x1e3   : > { %3054 = vst [vmem:[%s5669_s16 + $0x58] sm:$0xff] %v4217_v12 }
 0x1e4   : > { %3053 = vst [vmem:[%s5669_s16 + $0x50] sm:$0xff] %v4219_v45  ;;  %v4166_v18 = vpop.f32.mrb[12].mxu0 }
 0x1e5   : > { %v4221_v58 = vadd.f32 %v4220_v38, %v4166_v18  ;;  %v2912_v43 = vpop.f32.mrb[13].mxu0 }
 0x1e6   : > { %v4223_v8 = vadd.f32 %v4222_v25, %v2912_v43 }
 0x1e7   : > { %3056 = vst [vmem:[%s5669_s16 + $0x68] sm:$0xff] %v4221_v58 }
 0x1e8   : > { %3055 = vst [vmem:[%s5669_s16 + $0x60] sm:$0xff] %v4223_v8  ;;  %v4169_v62 = vpop.f32.mrb[14].mxu0  ;;  %v3972_v13 = vpop.f32.mrb[16].mxu1 }
 0x1e9   : > { %v4225_v44 = vadd.f32 %v4224_v32, %v4169_v62  ;;  %v4228_v9 = vadd.f32 %v3972_v13, %v5661_v2  ;;  %v2922_v37 = vpop.f32.mrb[15].mxu0  ;;  %v1850_v35 = vpop.f32.mrb[17].mxu1 }
 0x1ea   : > { %v4227_v46 = vadd.f32 %v4226_v21, %v2922_v37  ;;  %v4230_v3 = vadd.f32 %v5661_v2, %v1850_v35 }
 0x1eb   : > { %3058 = vst [vmem:[%s5669_s16 + $0x78] sm:$0xff] %v4225_v44 }
 0x1ec   : > { %3057 = vst [vmem:[%s5669_s16 + $0x70] sm:$0xff] %v4227_v46  ;;  %v4172_v34 = vpop.f32.mrb[16].mxu0  ;;  %v3975_v27 = vpop.f32.mrb[18].mxu1 }
 0x1ed   : > { %v4229_v5 = vadd.f32 %v4228_v9, %v4172_v34  ;;  %v4232_v15 = vadd.f32 %v3975_v27, %v5661_v2  ;;  %v2932_v11 = vpop.f32.mrb[17].mxu0  ;;  %v1860_v41 = vpop.f32.mrb[19].mxu1 }
 0x1ee   : > { %v4231_v19 = vadd.f32 %v4230_v3, %v2932_v11  ;;  %v4234_v31 = vadd.f32 %v5661_v2, %v1860_v41 }
 0x1ef   : > { %3060 = vst [vmem:[%s5669_s16 + $0x88] sm:$0xff] %v4229_v5 }
 0x1f0   : > { %3059 = vst [vmem:[%s5669_s16 + $0x80] sm:$0xff] %v4231_v19  ;;  %v4175_v54 = vpop.f32.mrb[18].mxu0  ;;  %v3978_v51 = vpop.f32.mrb[20].mxu1 }
 0x1f1   : > { %v4233_v14 = vadd.f32 %v4232_v15, %v4175_v54  ;;  %v4236_v53 = vadd.f32 %v3978_v51, %v5661_v2  ;;  %v2942_v40 = vpop.f32.mrb[19].mxu0  ;;  %v1870_v26 = vpop.f32.mrb[21].mxu1 }
 0x1f2   : > { %v4235_v28 = vadd.f32 %v4234_v31, %v2942_v40  ;;  %v4238_v33 = vadd.f32 %v5661_v2, %v1870_v26 }
 0x1f3   : > { %3062 = vst [vmem:[%s5669_s16 + $0x98] sm:$0xff] %v4233_v14 }
 0x1f4   : > { %3061 = vst [vmem:[%s5669_s16 + $0x90] sm:$0xff] %v4235_v28  ;;  %v4178_v60 = vpop.f32.mrb[20].mxu0  ;;  %v3981_v16 = vpop.f32.mrb[22].mxu1 }
 0x1f5   : > { %v4237_v52 = vadd.f32 %v4236_v53, %v4178_v60  ;;  %v4240_v4 = vadd.f32 %v3981_v16, %v5661_v2  ;;  %v2952_v29 = vpop.f32.mrb[21].mxu0  ;;  %v1880_v57 = vpop.f32.mrb[23].mxu1 }
 0x1f6   : > { %v4239_v59 = vadd.f32 %v4238_v33, %v2952_v29  ;;  %v4242_v17 = vadd.f32 %v5661_v2, %v1880_v57 }
 0x1f7   : > { %3064 = vst [vmem:[%s5669_s16 + $0xa8] sm:$0xff] %v4237_v52 }
 0x1f8   : > { %3063 = vst [vmem:[%s5669_s16 + $0xa0] sm:$0xff] %v4239_v59  ;;  %v4181_v10 = vpop.f32.mrb[22].mxu0  ;;  %v3984_v20 = vpop.f32.mrb[24].mxu1 }
 0x1f9   : > { %v4241_v23 = vadd.f32 %v4240_v4, %v4181_v10  ;;  %v4244_v30 = vadd.f32 %v3984_v20, %v5661_v2  ;;  %v2962_v39 = vpop.f32.mrb[23].mxu0  ;;  %v1890_v22 = vpop.f32.mrb[25].mxu1 }
 0x1fa   : > { %v4243_v47 = vadd.f32 %v4242_v17, %v2962_v39  ;;  %v4246_v36 = vadd.f32 %v5661_v2, %v1890_v22 }
 0x1fb   : > { %3066 = vst [vmem:[%s5669_s16 + $0xb8] sm:$0xff] %v4241_v23 }
 0x1fc   : > { %3065 = vst [vmem:[%s5669_s16 + $0xb0] sm:$0xff] %v4243_v47  ;;  %v4184_v49 = vpop.f32.mrb[24].mxu0  ;;  %v3987_v1 = vpop.f32.mrb[26].mxu1 }
 0x1fd   : > { %v4245_v48 = vadd.f32 %v4244_v30, %v4184_v49  ;;  %v4248_v55 = vadd.f32 %v3987_v1, %v5661_v2  ;;  %v2972_v7 = vpop.f32.mrb[25].mxu0  ;;  %v1900_v56 = vpop.f32.mrb[27].mxu1 }
 0x1fe   : > { %v4247_v63 = vadd.f32 %v4246_v36, %v2972_v7  ;;  %v4250_v0 = vadd.f32 %v5661_v2, %v1900_v56 }
 0x1ff   : > { %3068 = vst [vmem:[%s5669_s16 + $0xc8] sm:$0xff] %v4245_v48 }
 0x200   : > { %3067 = vst [vmem:[%s5669_s16 + $0xc0] sm:$0xff] %v4247_v63  ;;  %v4187_v6 = vpop.f32.mrb[26].mxu0  ;;  %v3990_v42 = vpop.f32.mrb[28].mxu1 }
 0x201   : > { %v4249_v50 = vadd.f32 %v4248_v55, %v4187_v6  ;;  %v4252_v61 = vadd.f32 %v3990_v42, %v5661_v2  ;;  %v2982_v12 = vpop.f32.mrb[27].mxu0  ;;  %v1910_v24 = vpop.f32.mrb[29].mxu1 }
 0x202   : > { %v4251_v45 = vadd.f32 %v4250_v0, %v2982_v12  ;;  %v4254_v38 = vadd.f32 %v5661_v2, %v1910_v24 }
 0x203   : > { %3070 = vst [vmem:[%s5669_s16 + $0xd8] sm:$0xff] %v4249_v50 }
 0x204   : > { %3069 = vst [vmem:[%s5669_s16 + $0xd0] sm:$0xff] %v4251_v45  ;;  %v4190_v25 = vpop.f32.mrb[28].mxu0  ;;  %v3993_v18 = vpop.f32.mrb[30].mxu1 }
 0x205   : > { %v4253_v58 = vadd.f32 %v4252_v61, %v4190_v25  ;;  %v4256_v43 = vadd.f32 %v3993_v18, %v5661_v2  ;;  %v2992_v8 = vpop.f32.mrb[29].mxu0  ;;  %v1920_v32 = vpop.f32.mrb[31].mxu1 }
 0x206   : > { %v4255_v21 = vadd.f32 %v4254_v38, %v2992_v8  ;;  %v4258_v62 = vadd.f32 %v5661_v2, %v1920_v32 }
 0x207   : > { %3072 = vst [vmem:[%s5669_s16 + $0xe8] sm:$0xff] %v4253_v58 }
 0x208   : > { %3071 = vst [vmem:[%s5669_s16 + $0xe0] sm:$0xff] %v4255_v21  ;;  %v4193_v13 = vpop.f32.mrb[30].mxu0 }
 0x209   : > { %v4257_v44 = vadd.f32 %v4256_v43, %v4193_v13  ;;  %v3002_v9 = vpop.f32.mrb[31].mxu0 }
 0x20a   : > { %v4259_v37 = vadd.f32 %v4258_v62, %v3002_v9 }
 0x20b   : > { %3074 = vst [vmem:[%s5669_s16 + $0xf8] sm:$0xff] %v4257_v44 }
 0x20c   : > { %3073 = vst [vmem:[%s5669_s16 + $0xf0] sm:$0xff] %v4259_v37 }
 0x20d PF: > { %s13_s12 = sadd.s32 1, %s4499_s12  }
 0x20e   : > { %p10_p4 = scmp.ge.s32.totalorder %s13_s12, 4  }
 0x210   :  { %12 = sbr.rel (!%p10_p4) target bundleno = 1 (0x1), region = 70 }

</bundles_post_ra>
